<compile_context>
chip_gen: v6e
topology: v6e:2x2x1
jax: 0.10.0
libtpu: 0.0.40
codegen_flags: <defaults>
</compile_context>

<pallas_src>
import functools

import jax
import jax.numpy as jnp
from jax.experimental import pallas as pl
from jax.experimental.pallas import tpu as pltpu


def _elu(x):
    # exp only on the non-positive branch to avoid inf in the dead branch.
    return jnp.where(x > 0, x, jnp.exp(jnp.minimum(x, 0.0)) - 1.0)


# ----------------------------------------------------------------------------
# Fused kernel: embed (TB graphs / step) + loss partial sums + classifier head
# ----------------------------------------------------------------------------
def vgae_fused_kernel(g_ref, x_ref,
                      w_s_ref, b_s_ref,
                      w_mulv_ref, b_mulv_ref,
                      w_dec_ref, b_dec_ref,
                      w1_ref, b1_ref,
                      w2_ref, b2_ref,
                      beta_ref,
                      logp_ref, kl_ref, mse_ref,
                      pooled_buf):
    tb, n, _ = g_ref.shape
    f_in = x_ref.shape[-1]
    l_dim = w_s_ref.shape[1]
    n_steps = pooled_buf.shape[0]
    batch = n_steps * tb
    m_nodes = batch * n                      # total node count across the batch

    b = pl.program_id(0)

    @pl.when(b == 0)
    def _init():
        kl_ref[...] = jnp.zeros_like(kl_ref)
        mse_ref[...] = jnp.zeros_like(mse_ref)

    g = g_ref[...]                           # (TB, N, N)
    x = x_ref[...]                           # (TB, N, F_in)

    # norm_g: row-normalize adjacency; reciprocal runs on the EUP (own VLIW slot).
    row_sum = jnp.sum(g, axis=-1, keepdims=True)          # (TB, N, 1)
    g = g * pl.reciprocal(row_sum)

    # s_gcn: batched propagation, then ONE row-stacked matmul for the projection.
    gx = jnp.einsum('bij,bjf->bif', g, x,
                    preferred_element_type=jnp.float32)    # (TB, N, F_in)
    h = _elu(jnp.dot(gx.reshape(tb * n, f_in), w_s_ref[...],
                     preferred_element_type=jnp.float32) + b_s_ref[...])   # (TB*N, L)
    h3 = h.reshape(tb, n, l_dim)

    # mu / logvar: shared propagation g @ h, fused (L, 2) projection.
    gh = jnp.einsum('bij,bjl->bil', g, h3,
                    preferred_element_type=jnp.float32).reshape(tb * n, l_dim)
    mulv = _elu(jnp.dot(gh, w_mulv_ref[...],
                        preferred_element_type=jnp.float32) + b_mulv_ref[...])  # (TB*N, 2)
    mu = mulv[:, 0:1]                        # (TB*N, 1)
    lv = mulv[:, 1:2]                        # (TB*N, 1)

    # reparameterize (eval) -> mu;  v = sigmoid(beta * mu), beta read from SMEM.
    beta = beta_ref[0, 0]
    v = jax.nn.sigmoid(beta * mu)            # (TB*N, 1)

    # dec GCN:  g @ v, then Linear(1, L) as a broadcast multiply (rank-1, keep it off MXU).
    gv = jnp.einsum('bij,bjk->bik', g, v.reshape(tb, n, 1),
                    preferred_element_type=jnp.float32).reshape(tb * n, 1)
    d = _elu(gv * w_dec_ref[...] + b_dec_ref[...])          # (TB*N, L)

    # graph pooling:  h.T @ v per graph == sum_n h[g, n, :] * v[g, n]
    pooled_buf[b] = jnp.sum(h3 * v.reshape(tb, n, 1), axis=1)   # (TB, L)

    # fused loss partial sums (rs / ds / mus / logvars never written to HBM).
    # exp(logvar)^2 == exp(2*logvar): one EUP call instead of exp + square.
    kl_terms = 1.0 + 2.0 * lv - mu * mu - jnp.exp(2.0 * lv)     # (TB*N, 1)
    kl_ref[...] += jnp.sum(kl_terms, keepdims=True)
    mse_ref[...] += jnp.sum((h - d) ** 2, keepdims=True)

    @pl.when(b == pl.num_programs(0) - 1)
    def _finalize():
        # KL = -0.5/M * mean(sum(...)) = -0.5 * total / M^2 ;  MSE = SSE / (M * L)
        kl_ref[...] = kl_ref[...] * (-0.5 / float(m_nodes * m_nodes))
        mse_ref[...] = mse_ref[...] * (1.0 / float(m_nodes * l_dim))

        # classifier head (eval: dropout = identity) + log_softmax, on resident pooled rows
        allp = pooled_buf[...].reshape(batch, l_dim)            # (B, L)
        h1 = _elu(jnp.dot(allp, w1_ref[...],
                          preferred_element_type=jnp.float32) + b1_ref[...])
        logits = jnp.dot(h1, w2_ref[...],
                         preferred_element_type=jnp.float32) + b2_ref[...]
        z = logits - jnp.max(logits, axis=1, keepdims=True)
        lse = jnp.log(jnp.sum(jnp.exp(z), axis=1, keepdims=True))
        logp_ref[...] = z - lse                                  # log_softmax, dim=1


def _pick_tb(batch, n, budget_bytes=4 << 20):
    """Largest divisor of `batch` whose (tb, N, N) adjacency block fits the budget.

    Prefers tb that is a multiple of 8 (or the whole batch) so in-kernel reshapes
    stay sublane-tile aligned.  Budget is conservative so double-buffered blocks
    stay well under the scoped VMEM limit on v7x (64 MiB physical / 32 MiB scoped).
    """
    cap = max(1, budget_bytes // (n * n * 4))
    divs = [d for d in range(1, batch + 1) if batch % d == 0 and d <= cap]
    mult8 = [d for d in divs if d % 8 == 0 or d == batch]
    return max(mult8) if mult8 else max(divs)


def vgae_fused(gs, xs, params, tb=None):
    B, N, _ = gs.shape
    F_in = xs.shape[-1]
    L = params["w_s"].shape[1]
    C = params["w2"].shape[1]

    if tb is None:
        tb = _pick_tb(B, N)
    assert B % tb == 0, f"batch {B} must be divisible by tb={tb}"
    n_steps = B // tb

    def whole(shape):
        nd = len(shape)
        return pl.BlockSpec(shape, lambda b: (0,) * nd)

    grid_spec = pltpu.PrefetchScalarGridSpec(
        num_scalar_prefetch=0,
        grid=(n_steps,),
        in_specs=[
            pl.BlockSpec((tb, N, N), lambda b: (b, 0, 0)),
            pl.BlockSpec((tb, N, F_in), lambda b: (b, 0, 0)),
            whole(params["w_s"].shape), whole(params["b_s"].shape),
            whole(params["w_mulv"].shape), whole(params["b_mulv"].shape),
            whole(params["w_dec"].shape), whole(params["b_dec"].shape),
            whole(params["w1"].shape), whole(params["b1"].shape),
            whole(params["w2"].shape), whole(params["b2"].shape),
            pl.BlockSpec(memory_space=pltpu.MemorySpace.SMEM),   # beta scalar -> SMEM
        ],
        out_specs=[
            pl.BlockSpec((B, C), lambda b: (0, 0)),   # log-probs (written once, last step)
            pl.BlockSpec((1, 1), lambda b: (0, 0)),   # KL term (accumulated across steps)
            pl.BlockSpec((1, 1), lambda b: (0, 0)),   # MSE term (accumulated across steps)
        ],
        scratch_shapes=[pltpu.VMEM((n_steps, tb, L), jnp.float32)],  # pooled embeddings
    )
    out_shape = (
        jax.ShapeDtypeStruct((B, C), jnp.float32),
        jax.ShapeDtypeStruct((1, 1), jnp.float32),
        jax.ShapeDtypeStruct((1, 1), jnp.float32),
    )
    return pl.pallas_call(
        vgae_fused_kernel,
        out_shape=out_shape,
        grid_spec=grid_spec,
        # Grid axis carries accumulators + pooled scratch -> it's a reduction axis.
        compiler_params=pltpu.CompilerParams(dimension_semantics=("arbitrary",)),
    )(gs, xs,
      params["w_s"], params["b_s"],
      params["w_mulv"], params["b_mulv"],
      params["w_dec"], params["b_dec"],
      params["w1"], params["b1"],
      params["w2"], params["b2"],
      params["beta"])


# ----------------------------------------------------------------------------
# Full forward: one Pallas kernel + tiny label-dependent glue in plain JAX
# ----------------------------------------------------------------------------
@functools.partial(jax.jit, static_argnames=("tb",))
def vgae_forward(gs, xs, labels, params, tb=None):
    logp, kl, mse = vgae_fused(gs, xs, params, tb=tb)
    # nll_loss (mean reduction) on the log-softmax output
    nll = -jnp.mean(jnp.take_along_axis(logp, labels[:, None], axis=1))
    loss = nll + kl[0, 0] + mse[0, 0]
    preds = jnp.argmax(logp, axis=1)
    acc = jnp.mean((preds == labels).astype(jnp.float32))
    return loss, acc


# ----------------------------------------------------------------------------
# Parameter construction (deterministic, synthetic)
# ----------------------------------------------------------------------------
def init_params(key, in_dim, l_dim, h_dim, n_classes):
    ks = jax.random.split(key, 8)
    s = 0.1
    return {
        # GCN linear layers, stored as (in, out)
        "w_s":    jax.random.normal(ks[0], (in_dim, l_dim), jnp.float32) * s,
        "b_s":    jnp.zeros((1, l_dim), jnp.float32),
        # mu / logvar projections fused: column 0 = mu, column 1 = logvar
        "w_mulv": jax.random.normal(ks[1], (l_dim, 2), jnp.float32) * s,
        "b_mulv": jnp.zeros((1, 2), jnp.float32),
        "w_dec":  jax.random.normal(ks[2], (1, l_dim), jnp.float32) * s,
        "b_dec":  jnp.zeros((1, l_dim), jnp.float32),
        # classifier head
        "w1":     jax.random.normal(ks[3], (l_dim, h_dim), jnp.float32) * s,
        "b1":     jnp.zeros((1, h_dim), jnp.float32),
        "w2":     jax.random.normal(ks[4], (h_dim, n_classes), jnp.float32) * s,
        "b2":     jnp.zeros((1, n_classes), jnp.float32),
        # beta ~ U(0, 100), kept as (1, 1) so it rides the SMEM scalar path
        "beta":   jax.random.uniform(ks[5], (1, 1), jnp.float32, 0.0, 100.0),
    }


if __name__ == "__main__":
    B, N = 16, 8          # 16 graphs, 8 nodes each
    in_dim, l_dim, h_dim, n_classes = 16, 32, 32, 4

    key = jax.random.PRNGKey(0)
    k_g, k_x, k_lbl, k_p = jax.random.split(key, 4)

    # dense adjacencies (strictly positive so norm_g's row sums are nonzero)
    gs = jax.random.uniform(k_g, (B, N, N), jnp.float32, 0.1, 1.0)
    gs = gs + jnp.eye(N, dtype=jnp.float32)[None]        # self loops
    xs = jax.random.normal(k_x, (B, N, in_dim), jnp.float32)
    labels = jax.random.randint(k_lbl, (B,), 0, n_classes, jnp.int32)

    params = init_params(k_p, in_dim, l_dim, h_dim, n_classes)

    # tb=8 -> 8 graphs / grid step (64-row stacked matmuls), 2 grid steps total.
    loss, acc = vgae_forward(gs, xs, labels, params, tb=8)
    jax.block_until_ready((loss, acc))
    assert jnp.isfinite(loss) and jnp.isfinite(acc)
    print("KERNEL_OK")
</pallas_src>

<mosaic_0001>
module attributes {stable_mosaic.version = 11 : i64} {
  func.func @vgae_fused_kernel(%arg0: i32, %arg1: memref<8x8x8xf32, #tpu.memory_space<vmem>>, %arg2: memref<8x8x16xf32, #tpu.memory_space<vmem>>, %arg3: memref<16x32xf32, #tpu.memory_space<vmem>>, %arg4: memref<1x32xf32, #tpu.memory_space<vmem>>, %arg5: memref<32x2xf32, #tpu.memory_space<vmem>>, %arg6: memref<1x2xf32, #tpu.memory_space<vmem>>, %arg7: memref<1x32xf32, #tpu.memory_space<vmem>>, %arg8: memref<1x32xf32, #tpu.memory_space<vmem>>, %arg9: memref<32x32xf32, #tpu.memory_space<vmem>>, %arg10: memref<1x32xf32, #tpu.memory_space<vmem>>, %arg11: memref<32x4xf32, #tpu.memory_space<vmem>>, %arg12: memref<1x4xf32, #tpu.memory_space<vmem>>, %arg13: memref<1x1xf32, #tpu.memory_space<smem>>, %arg14: memref<16x4xf32, #tpu.memory_space<vmem>>, %arg15: memref<1x1xf32, #tpu.memory_space<vmem>>, %arg16: memref<1x1xf32, #tpu.memory_space<vmem>>, %arg17: memref<2x8x32xf32, #tpu.memory_space<vmem>>) attributes {dimension_semantics = [#tpu.dimension_semantics<arbitrary>], iteration_bounds = array<i64: 2>, scalar_prefetch = 0 : i64, scratch_operands = 1 : i64, tpu.core_type = #tpu.core_type<tc>, window_params = [{transform_indices = @transform_0, window_bounds = array<i64: 8, 8, 8>}, {transform_indices = @transform_1, window_bounds = array<i64: 8, 8, 16>}, {pipeline_mode = #tpu.pipeline_mode<synchronous>, transform_indices = @transform_2, window_bounds = array<i64: 16, 32>}, {pipeline_mode = #tpu.pipeline_mode<synchronous>, transform_indices = @transform_3, window_bounds = array<i64: 1, 32>}, {pipeline_mode = #tpu.pipeline_mode<synchronous>, transform_indices = @transform_4, window_bounds = array<i64: 32, 2>}, {pipeline_mode = #tpu.pipeline_mode<synchronous>, transform_indices = @transform_5, window_bounds = array<i64: 1, 2>}, {pipeline_mode = #tpu.pipeline_mode<synchronous>, transform_indices = @transform_6, window_bounds = array<i64: 1, 32>}, {pipeline_mode = #tpu.pipeline_mode<synchronous>, transform_indices = @transform_7, window_bounds = array<i64: 1, 32>}, {pipeline_mode = #tpu.pipeline_mode<synchronous>, transform_indices = @transform_8, window_bounds = array<i64: 32, 32>}, {pipeline_mode = #tpu.pipeline_mode<synchronous>, transform_indices = @transform_9, window_bounds = array<i64: 1, 32>}, {pipeline_mode = #tpu.pipeline_mode<synchronous>, transform_indices = @transform_10, window_bounds = array<i64: 32, 4>}, {pipeline_mode = #tpu.pipeline_mode<synchronous>, transform_indices = @transform_11, window_bounds = array<i64: 1, 4>}, {transform_indices = @transform_12, window_bounds = array<i64: 1, 1>}, {pipeline_mode = #tpu.pipeline_mode<synchronous>, transform_indices = @transform_13, window_bounds = array<i64: 16, 4>}, {pipeline_mode = #tpu.pipeline_mode<synchronous>, transform_indices = @transform_14, window_bounds = array<i64: 1, 1>}, {pipeline_mode = #tpu.pipeline_mode<synchronous>, transform_indices = @transform_15, window_bounds = array<i64: 1, 1>}]} {
    %c0_i32 = arith.constant 0 : i32
    %0 = arith.cmpi eq, %arg0, %c0_i32 : i32
    %1 = arith.extui %0 : i1 to i32
    %c0_i32_0 = arith.constant 0 : i32
    %2 = arith.cmpi ne, %1, %c0_i32_0 : i32
    scf.if %2 {
      %cst_52 = arith.constant 0.000000e+00 : f32
      %108 = vector.broadcast %cst_52 : f32 to vector<1x1xf32>
      %c0_53 = arith.constant 0 : index
      %c0_54 = arith.constant 0 : index
      %109 = vector.load %arg15[%c0_53, %c0_54] : memref<1x1xf32, #tpu.memory_space<vmem>>, vector<1x1xf32>
      tpu.vector_store %arg15[%c0_53, %c0_54], %108 {strides = array<i32>} : memref<1x1xf32, #tpu.memory_space<vmem>>, vector<1x1xf32>,
      %cst_55 = arith.constant 0.000000e+00 : f32
      %110 = vector.broadcast %cst_55 : f32 to vector<1x1xf32>
      %c0_56 = arith.constant 0 : index
      %c0_57 = arith.constant 0 : index
      %111 = vector.load %arg16[%c0_56, %c0_57] : memref<1x1xf32, #tpu.memory_space<vmem>>, vector<1x1xf32>
      tpu.vector_store %arg16[%c0_56, %c0_57], %110 {strides = array<i32>} : memref<1x1xf32, #tpu.memory_space<vmem>>, vector<1x1xf32>,
    } else {
    }
    %c0 = arith.constant 0 : index
    %c0_1 = arith.constant 0 : index
    %c0_2 = arith.constant 0 : index
    %3 = vector.load %arg1[%c0, %c0_1, %c0_2] : memref<8x8x8xf32, #tpu.memory_space<vmem>>, vector<8x8x8xf32>
    %c0_3 = arith.constant 0 : index
    %c0_4 = arith.constant 0 : index
    %c0_5 = arith.constant 0 : index
    %4 = vector.load %arg2[%c0_3, %c0_4, %c0_5] : memref<8x8x16xf32, #tpu.memory_space<vmem>>, vector<8x8x16xf32>
    %cst = arith.constant dense<0.000000e+00> : vector<8x8xf32>
    %5 = vector.multi_reduction <add>, %3, %cst [2] : vector<8x8x8xf32> to vector<8x8xf32>
    %6 = vector.shape_cast %5 : vector<8x8xf32> to vector<8x8x1xf32>
    %7 = tpu.reciprocal %6 : vector<8x8x1xf32> -> vector<8x8x1xf32>
    %8 = vector.broadcast %7 : vector<8x8x1xf32> to vector<8x8x8xf32>
    %9 = arith.mulf %3, %8 : vector<8x8x8xf32>
    "tpu.trace_start"() <{level = 10 : i32, message = "bij,bjf->bif"}> : () -> ()
    %cst_6 = arith.constant dense<0.000000e+00> : vector<8x8x16xf32>
    %10 = tpu.matmul %9, %4, %cst_6 {dimension_numbers = #tpu.dot_dimension_numbers<[2], [1], [1], [2], [0, 0, 0, 1, 1, 2], [0], [0]>} : vector<8x8x8xf32>, vector<8x8x16xf32>, vector<8x8x16xf32> -> vector<8x8x16xf32>
    "tpu.trace_stop"() : () -> ()
    %11 = vector.shape_cast %10 : vector<8x8x16xf32> to vector<64x16xf32>
    %c0_7 = arith.constant 0 : index
    %c0_8 = arith.constant 0 : index
    %12 = vector.load %arg3[%c0_7, %c0_8] : memref<16x32xf32, #tpu.memory_space<vmem>>, vector<16x32xf32>
    %cst_9 = arith.constant dense<0.000000e+00> : vector<64x32xf32>
    %13 = tpu.matmul %11, %12, %cst_9 {dimension_numbers = #tpu.dot_dimension_numbers<[1], [0], [0], [1], [0, 0, 1, 1], [], []>} : vector<64x16xf32>, vector<16x32xf32>, vector<64x32xf32> -> vector<64x32xf32>
    %c0_10 = arith.constant 0 : index
    %c0_11 = arith.constant 0 : index
    %14 = vector.load %arg4[%c0_10, %c0_11] : memref<1x32xf32, #tpu.memory_space<vmem>>, vector<1x32xf32>
    %15 = vector.broadcast %14 : vector<1x32xf32> to vector<64x32xf32>
    %16 = arith.addf %13, %15 : vector<64x32xf32>
    %cst_12 = arith.constant 0.000000e+00 : f32
    %17 = vector.broadcast %cst_12 : f32 to vector<64x32xf32>
    %18 = arith.cmpf ogt, %16, %17 : vector<64x32xf32>
    %cst_13 = arith.constant 0.000000e+00 : f32
    %19 = vector.broadcast %cst_13 : f32 to vector<64x32xf32>
    %20 = arith.minimumf %16, %19 : vector<64x32xf32>
    %21 = math.exp %20 : vector<64x32xf32>
    %cst_14 = arith.constant 1.000000e+00 : f32
    %22 = vector.broadcast %cst_14 : f32 to vector<64x32xf32>
    %23 = arith.subf %21, %22 : vector<64x32xf32>
    %24 = arith.select %18, %16, %23 : vector<64x32xi1>, vector<64x32xf32>
    %25 = vector.shape_cast %24 : vector<64x32xf32> to vector<8x8x32xf32>
    "tpu.trace_start"() <{level = 10 : i32, message = "bij,bjl->bil"}> : () -> ()
    %cst_15 = arith.constant dense<0.000000e+00> : vector<8x8x32xf32>
    %26 = tpu.matmul %9, %25, %cst_15 {dimension_numbers = #tpu.dot_dimension_numbers<[2], [1], [1], [2], [0, 0, 0, 1, 1, 2], [0], [0]>} : vector<8x8x8xf32>, vector<8x8x32xf32>, vector<8x8x32xf32> -> vector<8x8x32xf32>
    "tpu.trace_stop"() : () -> ()
    %27 = vector.shape_cast %26 : vector<8x8x32xf32> to vector<64x32xf32>
    %c0_16 = arith.constant 0 : index
    %c0_17 = arith.constant 0 : index
    %28 = vector.load %arg5[%c0_16, %c0_17] : memref<32x2xf32, #tpu.memory_space<vmem>>, vector<32x2xf32>
    %cst_18 = arith.constant dense<0.000000e+00> : vector<64x2xf32>
    %29 = tpu.matmul %27, %28, %cst_18 {dimension_numbers = #tpu.dot_dimension_numbers<[1], [0], [0], [1], [0, 0, 1, 1], [], []>} : vector<64x32xf32>, vector<32x2xf32>, vector<64x2xf32> -> vector<64x2xf32>
    %c0_19 = arith.constant 0 : index
    %c0_20 = arith.constant 0 : index
    %30 = vector.load %arg6[%c0_19, %c0_20] : memref<1x2xf32, #tpu.memory_space<vmem>>, vector<1x2xf32>
    %31 = vector.broadcast %30 : vector<1x2xf32> to vector<64x2xf32>
    %32 = arith.addf %29, %31 : vector<64x2xf32>
    %cst_21 = arith.constant 0.000000e+00 : f32
    %33 = vector.broadcast %cst_21 : f32 to vector<64x2xf32>
    %34 = arith.cmpf ogt, %32, %33 : vector<64x2xf32>
    %cst_22 = arith.constant 0.000000e+00 : f32
    %35 = vector.broadcast %cst_22 : f32 to vector<64x2xf32>
    %36 = arith.minimumf %32, %35 : vector<64x2xf32>
    %37 = math.exp %36 : vector<64x2xf32>
    %cst_23 = arith.constant 1.000000e+00 : f32
    %38 = vector.broadcast %cst_23 : f32 to vector<64x2xf32>
    %39 = arith.subf %37, %38 : vector<64x2xf32>
    %40 = arith.select %34, %32, %39 : vector<64x2xi1>, vector<64x2xf32>
    %41 = vector.extract_strided_slice %40 {offsets = [0, 0], sizes = [64, 1], strides = [1, 1]} : vector<64x2xf32> to vector<64x1xf32>
    %42 = vector.extract_strided_slice %40 {offsets = [0, 1], sizes = [64, 1], strides = [1, 1]} : vector<64x2xf32> to vector<64x1xf32>
    %c0_24 = arith.constant 0 : index
    %c0_25 = arith.constant 0 : index
    %43 = memref.load %arg13[%c0_24, %c0_25] : memref<1x1xf32, #tpu.memory_space<smem>>
    %44 = vector.broadcast %43 : f32 to vector<64x1xf32>
    %45 = arith.mulf %44, %41 : vector<64x1xf32>
    %46 = arith.negf %45 : vector<64x1xf32>
    %47 = math.exp %46 : vector<64x1xf32>
    %cst_26 = arith.constant 1.000000e+00 : f32
    %48 = vector.broadcast %cst_26 : f32 to vector<64x1xf32>
    %49 = arith.addf %48, %47 : vector<64x1xf32>
    %50 = arith.divf %48, %49 : vector<64x1xf32>
    %51 = vector.shape_cast %50 : vector<64x1xf32> to vector<8x8x1xf32>
    "tpu.trace_start"() <{level = 10 : i32, message = "bij,bjk->bik"}> : () -> ()
    %cst_27 = arith.constant dense<0.000000e+00> : vector<8x8x1xf32>
    %52 = tpu.matmul %9, %51, %cst_27 {dimension_numbers = #tpu.dot_dimension_numbers<[2], [1], [1], [2], [0, 0, 0, 1, 1, 2], [0], [0]>} : vector<8x8x8xf32>, vector<8x8x1xf32>, vector<8x8x1xf32> -> vector<8x8x1xf32>
    "tpu.trace_stop"() : () -> ()
    %53 = vector.shape_cast %52 : vector<8x8x1xf32> to vector<64x1xf32>
    %c0_28 = arith.constant 0 : index
    %c0_29 = arith.constant 0 : index
    %54 = vector.load %arg7[%c0_28, %c0_29] : memref<1x32xf32, #tpu.memory_space<vmem>>, vector<1x32xf32>
    %55 = vector.broadcast %53 : vector<64x1xf32> to vector<64x32xf32>
    %56 = vector.broadcast %54 : vector<1x32xf32> to vector<64x32xf32>
    %57 = arith.mulf %55, %56 : vector<64x32xf32>
    %c0_30 = arith.constant 0 : index
    %c0_31 = arith.constant 0 : index
    %58 = vector.load %arg8[%c0_30, %c0_31] : memref<1x32xf32, #tpu.memory_space<vmem>>, vector<1x32xf32>
    %59 = vector.broadcast %58 : vector<1x32xf32> to vector<64x32xf32>
    %60 = arith.addf %57, %59 : vector<64x32xf32>
    %cst_32 = arith.constant 0.000000e+00 : f32
    %61 = vector.broadcast %cst_32 : f32 to vector<64x32xf32>
    %62 = arith.cmpf ogt, %60, %61 : vector<64x32xf32>
    %cst_33 = arith.constant 0.000000e+00 : f32
    %63 = vector.broadcast %cst_33 : f32 to vector<64x32xf32>
    %64 = arith.minimumf %60, %63 : vector<64x32xf32>
    %65 = math.exp %64 : vector<64x32xf32>
    %cst_34 = arith.constant 1.000000e+00 : f32
    %66 = vector.broadcast %cst_34 : f32 to vector<64x32xf32>
    %67 = arith.subf %65, %66 : vector<64x32xf32>
    %68 = arith.select %62, %60, %67 : vector<64x32xi1>, vector<64x32xf32>
    %69 = vector.shape_cast %50 : vector<64x1xf32> to vector<8x8x1xf32>
    %70 = vector.broadcast %69 : vector<8x8x1xf32> to vector<8x8x32xf32>
    %71 = arith.mulf %25, %70 : vector<8x8x32xf32>
    %cst_35 = arith.constant dense<0.000000e+00> : vector<8x32xf32>
    %72 = vector.multi_reduction <add>, %71, %cst_35 [1] : vector<8x8x32xf32> to vector<8x32xf32>
    %73 = arith.index_cast %arg0 : i32 to index
    %c0_36 = arith.constant 0 : index
    %c0_37 = arith.constant 0 : index
    %74 = vector.load %arg17[%73, %c0_36, %c0_37] : memref<2x8x32xf32, #tpu.memory_space<vmem>>, vector<1x8x32xf32>
    %75 = vector.shape_cast %74 : vector<1x8x32xf32> to vector<8x32xf32>
    %76 = vector.shape_cast %72 : vector<8x32xf32> to vector<1x8x32xf32>
    tpu.vector_store %arg17[%73, %c0_36, %c0_37], %76 {strides = array<i32>} : memref<2x8x32xf32, #tpu.memory_space<vmem>>, vector<1x8x32xf32>,
    %cst_38 = arith.constant 2.000000e+00 : f32
    %77 = vector.broadcast %cst_38 : f32 to vector<64x1xf32>
    %78 = arith.mulf %77, %42 : vector<64x1xf32>
    %cst_39 = arith.constant 1.000000e+00 : f32
    %79 = vector.broadcast %cst_39 : f32 to vector<64x1xf32>
    %80 = arith.addf %79, %78 : vector<64x1xf32>
    %81 = arith.mulf %41, %41 : vector<64x1xf32>
    %82 = arith.subf %80, %81 : vector<64x1xf32>
    %cst_40 = arith.constant 2.000000e+00 : f32
    %83 = vector.broadcast %cst_40 : f32 to vector<64x1xf32>
    %84 = arith.mulf %83, %42 : vector<64x1xf32>
    %85 = math.exp %84 : vector<64x1xf32>
    %86 = arith.subf %82, %85 : vector<64x1xf32>
    %c0_41 = arith.constant 0 : index
    %c0_42 = arith.constant 0 : index
    %87 = vector.load %arg15[%c0_41, %c0_42] : memref<1x1xf32, #tpu.memory_space<vmem>>, vector<1x1xf32>
    %88 = vector.shape_cast %86 : vector<64x1xf32> to vector<1x64x1xf32>
    %cst_43 = arith.constant dense<0.000000e+00> : vector<1xf32>
    %89 = vector.multi_reduction <add>, %88, %cst_43 [1, 2] : vector<1x64x1xf32> to vector<1xf32>
    %90 = vector.shape_cast %89 : vector<1xf32> to vector<1x1x1xf32>
    %91 = vector.extract %90[0, 0, 0] : f32 from vector<1x1x1xf32>
    %92 = vector.broadcast %91 : f32 to vector<1x1xf32>
    %93 = arith.addf %87, %92 : vector<1x1xf32>
    %c0_44 = arith.constant 0 : index
    %c0_45 = arith.constant 0 : index
    %94 = vector.load %arg15[%c0_44, %c0_45] : memref<1x1xf32, #tpu.memory_space<vmem>>, vector<1x1xf32>
    tpu.vector_store %arg15[%c0_44, %c0_45], %93 {strides = array<i32>} : memref<1x1xf32, #tpu.memory_space<vmem>>, vector<1x1xf32>,
    %c0_46 = arith.constant 0 : index
    %c0_47 = arith.constant 0 : index
    %95 = vector.load %arg16[%c0_46, %c0_47] : memref<1x1xf32, #tpu.memory_space<vmem>>, vector<1x1xf32>
    %96 = arith.subf %24, %68 : vector<64x32xf32>
    %97 = arith.mulf %96, %96 : vector<64x32xf32>
    %98 = vector.shape_cast %97 : vector<64x32xf32> to vector<1x64x32xf32>
    %cst_48 = arith.constant dense<0.000000e+00> : vector<1xf32>
    %99 = vector.multi_reduction <add>, %98, %cst_48 [1, 2] : vector<1x64x32xf32> to vector<1xf32>
    %100 = vector.shape_cast %99 : vector<1xf32> to vector<1x1x1xf32>
    %101 = vector.extract %100[0, 0, 0] : f32 from vector<1x1x1xf32>
    %102 = vector.broadcast %101 : f32 to vector<1x1xf32>
    %103 = arith.addf %95, %102 : vector<1x1xf32>
    %c0_49 = arith.constant 0 : index
    %c0_50 = arith.constant 0 : index
    %104 = vector.load %arg16[%c0_49, %c0_50] : memref<1x1xf32, #tpu.memory_space<vmem>>, vector<1x1xf32>
    tpu.vector_store %arg16[%c0_49, %c0_50], %103 {strides = array<i32>} : memref<1x1xf32, #tpu.memory_space<vmem>>, vector<1x1xf32>,
    %c1_i32 = arith.constant 1 : i32
    %105 = arith.cmpi eq, %arg0, %c1_i32 : i32
    %106 = arith.extui %105 : i1 to i32
    %c0_i32_51 = arith.constant 0 : i32
    %107 = arith.cmpi ne, %106, %c0_i32_51 : i32
    scf.if %107 {
      %c0_52 = arith.constant 0 : index
      %c0_53 = arith.constant 0 : index
      %108 = vector.load %arg15[%c0_52, %c0_53] : memref<1x1xf32, #tpu.memory_space<vmem>>, vector<1x1xf32>
      %cst_54 = arith.constant -3.05175781E-5 : f32
      %109 = vector.broadcast %cst_54 : f32 to vector<1x1xf32>
      %110 = arith.mulf %108, %109 : vector<1x1xf32>
      %c0_55 = arith.constant 0 : index
      %c0_56 = arith.constant 0 : index
      %111 = vector.load %arg15[%c0_55, %c0_56] : memref<1x1xf32, #tpu.memory_space<vmem>>, vector<1x1xf32>
      tpu.vector_store %arg15[%c0_55, %c0_56], %110 {strides = array<i32>} : memref<1x1xf32, #tpu.memory_space<vmem>>, vector<1x1xf32>,
      %c0_57 = arith.constant 0 : index
      %c0_58 = arith.constant 0 : index
      %112 = vector.load %arg16[%c0_57, %c0_58] : memref<1x1xf32, #tpu.memory_space<vmem>>, vector<1x1xf32>
      %cst_59 = arith.constant 2.44140625E-4 : f32
      %113 = vector.broadcast %cst_59 : f32 to vector<1x1xf32>
      %114 = arith.mulf %112, %113 : vector<1x1xf32>
      %c0_60 = arith.constant 0 : index
      %c0_61 = arith.constant 0 : index
      %115 = vector.load %arg16[%c0_60, %c0_61] : memref<1x1xf32, #tpu.memory_space<vmem>>, vector<1x1xf32>
      tpu.vector_store %arg16[%c0_60, %c0_61], %114 {strides = array<i32>} : memref<1x1xf32, #tpu.memory_space<vmem>>, vector<1x1xf32>,
      %c0_62 = arith.constant 0 : index
      %c0_63 = arith.constant 0 : index
      %c0_64 = arith.constant 0 : index
      %116 = vector.load %arg17[%c0_62, %c0_63, %c0_64] : memref<2x8x32xf32, #tpu.memory_space<vmem>>, vector<2x8x32xf32>
      %117 = vector.shape_cast %116 : vector<2x8x32xf32> to vector<16x32xf32>
      %c0_65 = arith.constant 0 : index
      %c0_66 = arith.constant 0 : index
      %118 = vector.load %arg9[%c0_65, %c0_66] : memref<32x32xf32, #tpu.memory_space<vmem>>, vector<32x32xf32>
      %cst_67 = arith.constant dense<0.000000e+00> : vector<16x32xf32>
      %119 = tpu.matmul %117, %118, %cst_67 {dimension_numbers = #tpu.dot_dimension_numbers<[1], [0], [0], [1], [0, 0, 1, 1], [], []>} : vector<16x32xf32>, vector<32x32xf32>, vector<16x32xf32> -> vector<16x32xf32>
      %c0_68 = arith.constant 0 : index
      %c0_69 = arith.constant 0 : index
      %120 = vector.load %arg10[%c0_68, %c0_69] : memref<1x32xf32, #tpu.memory_space<vmem>>, vector<1x32xf32>
      %121 = vector.broadcast %120 : vector<1x32xf32> to vector<16x32xf32>
      %122 = arith.addf %119, %121 : vector<16x32xf32>
      %cst_70 = arith.constant 0.000000e+00 : f32
      %123 = vector.broadcast %cst_70 : f32 to vector<16x32xf32>
      %124 = arith.cmpf ogt, %122, %123 : vector<16x32xf32>
      %cst_71 = arith.constant 0.000000e+00 : f32
      %125 = vector.broadcast %cst_71 : f32 to vector<16x32xf32>
      %126 = arith.minimumf %122, %125 : vector<16x32xf32>
      %127 = math.exp %126 : vector<16x32xf32>
      %cst_72 = arith.constant 1.000000e+00 : f32
      %128 = vector.broadcast %cst_72 : f32 to vector<16x32xf32>
      %129 = arith.subf %127, %128 : vector<16x32xf32>
      %130 = arith.select %124, %122, %129 : vector<16x32xi1>, vector<16x32xf32>
      %c0_73 = arith.constant 0 : index
      %c0_74 = arith.constant 0 : index
      %131 = vector.load %arg11[%c0_73, %c0_74] : memref<32x4xf32, #tpu.memory_space<vmem>>, vector<32x4xf32>
      %cst_75 = arith.constant dense<0.000000e+00> : vector<16x4xf32>
      %132 = tpu.matmul %130, %131, %cst_75 {dimension_numbers = #tpu.dot_dimension_numbers<[1], [0], [0], [1], [0, 0, 1, 1], [], []>} : vector<16x32xf32>, vector<32x4xf32>, vector<16x4xf32> -> vector<16x4xf32>
      %c0_76 = arith.constant 0 : index
      %c0_77 = arith.constant 0 : index
      %133 = vector.load %arg12[%c0_76, %c0_77] : memref<1x4xf32, #tpu.memory_space<vmem>>, vector<1x4xf32>
      %134 = vector.broadcast %133 : vector<1x4xf32> to vector<16x4xf32>
      %135 = arith.addf %132, %134 : vector<16x4xf32>
      %cst_78 = arith.constant dense<0xFF800000> : vector<16xf32>
      %136 = vector.multi_reduction <maximumf>, %135, %cst_78 [1] : vector<16x4xf32> to vector<16xf32>
      %137 = vector.shape_cast %136 : vector<16xf32> to vector<16x1xf32>
      %138 = vector.broadcast %137 : vector<16x1xf32> to vector<16x4xf32>
      %139 = arith.subf %135, %138 : vector<16x4xf32>
      %140 = math.exp %139 : vector<16x4xf32>
      %cst_79 = arith.constant dense<0.000000e+00> : vector<16xf32>
      %141 = vector.multi_reduction <add>, %140, %cst_79 [1] : vector<16x4xf32> to vector<16xf32>
      %142 = vector.shape_cast %141 : vector<16xf32> to vector<16x1xf32>
      %143 = math.log %142 : vector<16x1xf32>
      %144 = vector.broadcast %143 : vector<16x1xf32> to vector<16x4xf32>
      %145 = arith.subf %139, %144 : vector<16x4xf32>
      %c0_80 = arith.constant 0 : index
      %c0_81 = arith.constant 0 : index
      %146 = vector.load %arg14[%c0_80, %c0_81] : memref<16x4xf32, #tpu.memory_space<vmem>>, vector<16x4xf32>
      tpu.vector_store %arg14[%c0_80, %c0_81], %145 {strides = array<i32>} : memref<16x4xf32, #tpu.memory_space<vmem>>, vector<16x4xf32>,
    } else {
    }
    return
  }
  func.func @transform_0(%arg0: i32) -> (i32, i32, i32) {
    %c0_i32 = arith.constant 0 : i32
    %c0_i32_0 = arith.constant 0 : i32
    %c0_i32_1 = arith.constant 0 : i32
    return %arg0, %c0_i32, %c0_i32_0 : i32, i32, i32
  }
  func.func @transform_1(%arg0: i32) -> (i32, i32, i32) {
    %c0_i32 = arith.constant 0 : i32
    %c0_i32_0 = arith.constant 0 : i32
    %c0_i32_1 = arith.constant 0 : i32
    return %arg0, %c0_i32, %c0_i32_0 : i32, i32, i32
  }
  func.func @transform_2(%arg0: i32) -> (i32, i32) {
    %c0_i32 = arith.constant 0 : i32
    %c0_i32_0 = arith.constant 0 : i32
    %c0_i32_1 = arith.constant 0 : i32
    return %c0_i32, %c0_i32_0 : i32, i32
  }
  func.func @transform_3(%arg0: i32) -> (i32, i32) {
    %c0_i32 = arith.constant 0 : i32
    %c0_i32_0 = arith.constant 0 : i32
    %c0_i32_1 = arith.constant 0 : i32
    return %c0_i32, %c0_i32_0 : i32, i32
  }
  func.func @transform_4(%arg0: i32) -> (i32, i32) {
    %c0_i32 = arith.constant 0 : i32
    %c0_i32_0 = arith.constant 0 : i32
    %c0_i32_1 = arith.constant 0 : i32
    return %c0_i32, %c0_i32_0 : i32, i32
  }
  func.func @transform_5(%arg0: i32) -> (i32, i32) {
    %c0_i32 = arith.constant 0 : i32
    %c0_i32_0 = arith.constant 0 : i32
    %c0_i32_1 = arith.constant 0 : i32
    return %c0_i32, %c0_i32_0 : i32, i32
  }
  func.func @transform_6(%arg0: i32) -> (i32, i32) {
    %c0_i32 = arith.constant 0 : i32
    %c0_i32_0 = arith.constant 0 : i32
    %c0_i32_1 = arith.constant 0 : i32
    return %c0_i32, %c0_i32_0 : i32, i32
  }
  func.func @transform_7(%arg0: i32) -> (i32, i32) {
    %c0_i32 = arith.constant 0 : i32
    %c0_i32_0 = arith.constant 0 : i32
    %c0_i32_1 = arith.constant 0 : i32
    return %c0_i32, %c0_i32_0 : i32, i32
  }
  func.func @transform_8(%arg0: i32) -> (i32, i32) {
    %c0_i32 = arith.constant 0 : i32
    %c0_i32_0 = arith.constant 0 : i32
    %c0_i32_1 = arith.constant 0 : i32
    return %c0_i32, %c0_i32_0 : i32, i32
  }
  func.func @transform_9(%arg0: i32) -> (i32, i32) {
    %c0_i32 = arith.constant 0 : i32
    %c0_i32_0 = arith.constant 0 : i32
    %c0_i32_1 = arith.constant 0 : i32
    return %c0_i32, %c0_i32_0 : i32, i32
  }
  func.func @transform_10(%arg0: i32) -> (i32, i32) {
    %c0_i32 = arith.constant 0 : i32
    %c0_i32_0 = arith.constant 0 : i32
    %c0_i32_1 = arith.constant 0 : i32
    return %c0_i32, %c0_i32_0 : i32, i32
  }
  func.func @transform_11(%arg0: i32) -> (i32, i32) {
    %c0_i32 = arith.constant 0 : i32
    %c0_i32_0 = arith.constant 0 : i32
    %c0_i32_1 = arith.constant 0 : i32
    return %c0_i32, %c0_i32_0 : i32, i32
  }
  func.func @transform_12(%arg0: i32) -> (i32, i32) {
    %c0_i32 = arith.constant 0 : i32
    %c0_i32_0 = arith.constant 0 : i32
    %c0_i32_1 = arith.constant 0 : i32
    return %c0_i32, %c0_i32_0 : i32, i32
  }
  func.func @transform_13(%arg0: i32) -> (i32, i32) {
    %c0_i32 = arith.constant 0 : i32
    %c0_i32_0 = arith.constant 0 : i32
    %c0_i32_1 = arith.constant 0 : i32
    return %c0_i32, %c0_i32_0 : i32, i32
  }
  func.func @transform_14(%arg0: i32) -> (i32, i32) {
    %c0_i32 = arith.constant 0 : i32
    %c0_i32_0 = arith.constant 0 : i32
    %c0_i32_1 = arith.constant 0 : i32
    return %c0_i32, %c0_i32_0 : i32, i32
  }
  func.func @transform_15(%arg0: i32) -> (i32, i32) {
    %c0_i32 = arith.constant 0 : i32
    %c0_i32_0 = arith.constant 0 : i32
    %c0_i32_1 = arith.constant 0 : i32
    return %c0_i32, %c0_i32_0 : i32, i32
  }
}

</mosaic_0001>

<bundles_post_ra>
// kernel: vgae_forward.1
= control target key start
LH: loop header
LB: loop body
LE: loop exit
PB: predicated region body
PF: predicated region fallthrough
CT: control target
= control target key end

     0   :  { %s4691_s0 = inlined_call_operand.vmem [shape: f32[16,8,8], index: 0, kind: input, shape index: {}]   ;;  %s4692_s1 = inlined_call_operand.vmem [shape: f32[16,8,16], index: 1, kind: input, shape index: {}]   ;;  %s4693_s2 = inlined_call_operand.vmem [shape: f32[16,32], index: 2, kind: input, shape index: {}]   ;;  %s4694_s3 = inlined_call_operand.vmem [shape: f32[1,32], index: 3, kind: input, shape index: {}]   ;;  %s4695_s4 = inlined_call_operand.vmem [shape: f32[32,2], index: 4, kind: input, shape index: {}]   ;;  %s4696_s5 = inlined_call_operand.vmem [shape: f32[1,2], index: 5, kind: input, shape index: {}]   ;;  %s4697_s6 = inlined_call_operand.vmem [shape: f32[1,32], index: 6, kind: input, shape index: {}]   ;;  %s4698_s7 = inlined_call_operand.vmem [shape: f32[1,32], index: 7, kind: input, shape index: {}]   ;;  %s4699_s8 = inlined_call_operand.vmem [shape: f32[32,32], index: 8, kind: input, shape index: {}]   ;;  %s4700_s9 = inlined_call_operand.vmem [shape: f32[1,32], index: 9, kind: input, shape index: {}]   ;;  %s4701_s10 = inlined_call_operand.vmem [shape: f32[32,4], index: 10, kind: input, shape index: {}]   ;;  %s4702_s11 = inlined_call_operand.vmem [shape: f32[1,4], index: 11, kind: input, shape index: {}]   ;;  %s4703_s12 = inlined_call_operand.<no memory space> [shape: f32[1,1], index: 12, kind: input, shape index: {}]   ;;  %s4704_s13 = inlined_call_operand.vmem [shape: f32[16,4], index: 13, kind: output, shape index: {0}]   ;;  %s4705_s14 = inlined_call_operand.hbm [shape: f32[1,1], index: 14, kind: output, shape index: {1}]   ;;  %s4706_s15 = inlined_call_operand.hbm [shape: f32[1,1], index: 15, kind: output, shape index: {2}]  }
   0x1   :  { %21 = sst [smem:[#allocation3]] %s4703_s12 }
   0x2   :  { %22 = vsyncpa [#allocation5], 0 }
   0x3   :  { %23 = vsyncpa [#allocation7], 0  ;;  %s4143_s20 = smov 0  }
   0x4 LB: > { %s4149_s21 = sadd.s32 4294967295, %s4050_s20   ;;  %p3472_p0 = scmp.ge.s32.totalorder %s4050_s20, 1  ;;  %s4050_s20 = sphi %s4143_s20, %s29_s20  }
   0x5   : > { %p442_p1 = scmp.lt.s32.totalorder %s4050_s20, 3 }
   0x7   : > { %p443_p2 = pnand %p3472_p0, %p442_p1 }
   0x8   : > { %s4154_s12 = sshll.u32 (!%p443_p2), %s4149_s21, 3  ;;  %p3477_p4 = scmp.ne.s32.totalorder (!%p443_p2), %s4149_s21, 0 }
   0x9   : > { %446 = sbr.rel (%p443_p2) target bundleno = 2392 (0x958), region = 72  ;;  %p491_p3 = scmp.lt.s32.totalorder (!%p443_p2), %s4154_s12, 15 }
   0xe   : > { %s492_s22 = scalar_select %p491_p3, %s4154_s12, 15 }
   0xf   : > { %505 = sbr.rel (%p3477_p4) target bundleno = 22 (0x16), region = 76 }
  0x10   : > { %s3474_s23 = sshll.u32 %s492_s22, 3 }
  0x11   : > { %s494_s26 = scalar_lea.vmem %s4691_s0, %s3474_s23  ;;  %s4164_s29 = scalar_lea.vmem %s4692_s1, %s3474_s23 }
  0x14   : > { %vm506_vm0 = vcmask 0   ;;  %v4052_v0 = vmov 0.0  }
  0x15   : > { %507 = vst.msk [vmem:[#allocation4] sm:$0x1] %vm506_vm0, %v4052_v0  ;;  %508 = vst.msk [vmem:[#allocation6] sm:$0x1] %vm506_vm0, %v4052_v0 }
  0x16 PF: > { %v509_v1 = vld [vmem:[%s494_s26] sm:$0xff]  ;;  %vm525_vm1 = vcmask 64512   ;;  %v511_v2 = vld [vmem:[%s494_s26 + $0x10] sm:$0xff]  ;;  %v510_v3 = vld [vmem:[%s494_s26 + $0x8] sm:$0xff]  ;;  %v4053_v17 = vmov 0.0   ;;  %vm4054_vm2 = vmmov 0  }
  0x17   : > { %v526_v4 = vsel %vm525_vm1, %v509_v1, 0.0  ;;  %v532_v5 = vsel %vm525_vm1, %v511_v2, 0.0  ;;  %v4169_v6 = vld [vmem:[%s494_s26 + $0x18] sm:$0xff]  ;;  %v529_v7 = vsel %vm525_vm1, %v510_v3, 0.0  ;;  %v4174_v9 = vld [vmem:[%s494_s26 + $0x20] sm:$0xff]  ;;  %v4176_v10 = vld [vmem:[%s494_s26 + $0x28] sm:$0xff]  ;;  %3652 = vmatprep.subr.mxu0 %v4053_v17  ;;  %3657 = vmatprep.subr.mxu1 %v4053_v17 }
  0x18   : > { %527 = vadd.xlane.f32.xlu0 %v526_v4  ;;  %533 = vadd.xlane.f32.xlu1 %v532_v5  ;;  %v535_v8 = vsel %vm525_vm1, %v4169_v6, 0.0  ;;  %v538_v11 = vsel %vm525_vm1, %v4174_v9, 0.0  ;;  %v541_v12 = vsel %vm525_vm1, %v4176_v10, 0.0  ;;  %v4182_v13 = vld [vmem:[%s494_s26 + $0x30] sm:$0xff]  ;;  %v4184_v14 = vld [vmem:[%s494_s26 + $0x38] sm:$0xff]  ;;  %v517_v18 = vld [vmem:[%s4164_s29] sm:$0xff] }
  0x19   : > { %v544_v15 = vsel %vm525_vm1, %v4182_v13, 0.0  ;;  %v547_v16 = vsel %vm525_vm1, %v4184_v14, 0.0  ;;  %3653 = vmatpush3.msra.mxu0 %v517_v18  ;;  %3654 = vmatprep.mubr.msk.f32.mxu0 %vm4054_vm2, %v4053_v17  ;;  %v518_v19 = vld [vmem:[%s4164_s29 + $0x8] sm:$0xff]  ;;  %v519_v31 = vld [vmem:[%s4164_s29 + $0x10] sm:$0xff]  ;;  %v520_v36 = vld [vmem:[%s4164_s29 + $0x18] sm:$0xff]  ;;  %vm1159_vm3 = vcmask 130048  }
  0x1a   : > { %3659 = vmatprep.mubr.msk.f32.mxu1 %vm4054_vm2, %v4053_v17  ;;  %3662 = vmatprep.subr.mxu0 %v4053_v17  ;;  %v521_v37 = vld [vmem:[%s4164_s29 + $0x20] sm:$0xff]  ;;  %v522_v42 = vld [vmem:[%s4164_s29 + $0x28] sm:$0xff]  ;;  %v523_v43 = vld [vmem:[%s4164_s29 + $0x30] sm:$0xff]  ;;  %vm1908_vm12 = vcmask 261120   ;;  %s2086_s18 = sld [smem:[#allocation3]]  ;;  %s4055_s19 = smov 1  }
  0x1b   : > { %3658 = vmatpush3.msra.mxu1 %v518_v19  ;;  %v524_v48 = vld [vmem:[%s4164_s29 + $0x38] sm:$0xff]  ;;  %v1151_v50 = vld [vmem:[%s4693_s2 + $0x8] sm:$0xff]  ;;  %v1150_v51 = vld [vmem:[%s4693_s2] sm:$0xff]  ;;  %s4057_s22 = smov 127   ;;  %s2950_s27 = scalar_lea.vmem [#allocation2], %s4154_s12 }
  0x1c   : > { %530 = vadd.xlane.f32.xlu0 %v529_v7  ;;  %536 = vadd.xlane.f32.xlu1 %v535_v8  ;;  %v3486_v4 = vld [vmem:[%s4694_s3] ss:$0 sm:$0xff]  ;;  %p3555_p5 = scmp.ne.s32.totalorder %s4149_s21, 1 }
  0x1d   : > { %3667 = vmatprep.subr.mxu1 %v4053_v17 }
  0x20   : > { %539 = vadd.xlane.f32.xlu0 %v538_v11  ;;  %542 = vadd.xlane.f32.xlu1 %v541_v12 }
  0x24   : > { %545 = vadd.xlane.f32.xlu0 %v544_v15  ;;  %548 = vadd.xlane.f32.xlu1 %v547_v16 }
  0xa1   : > { %v528_v20 = vpop.xlane.xlu0 %527  ;;  %v534_v21 = vpop.xlane.xlu1 %533 }
  0xa2   : > { %3864 = vrcp.f32 %v528_v20 }
  0xa3   : > { %3866 = vrcp.f32 %v534_v21 }
  0xa5   : > { %v531_v22 = vpop.xlane.xlu0 %530  ;;  %v537_v23 = vpop.xlane.xlu1 %536 }
  0xa6   : > { %3868 = vrcp.f32 %v531_v22 }
  0xa7   : > { %3870 = vrcp.f32 %v537_v23 }
  0xa9   : > { %v540_v24 = vpop.xlane.xlu0 %539  ;;  %v543_v25 = vpop.xlane.xlu1 %542 }
  0xaa   : > { %3872 = vrcp.f32 %v540_v24 }
  0xab   : > { %3874 = vrcp.f32 %v543_v25 }
  0xad   : > { %v546_v26 = vpop.xlane.xlu0 %545  ;;  %v549_v27 = vpop.xlane.xlu1 %548 }
  0xae   : > { %3876 = vrcp.f32 %v546_v26 }
  0xaf   : > { %v3865_v28 = vpop.eup %3864  ;;  %3878 = vrcp.f32 %v549_v27 }
  0xb0   : > { %v3867_v29 = vpop.eup %3866  ;;  %v4200_v30 = vmul.f32 %v3865_v28, %v509_v1 }
  0xb1   : > { %v4205_v32 = vmul.f32 %v3867_v29, %v511_v2 }
  0xb2   : > { %3655 = vmatmul.mubr.msk.f32.vlgmr.msra.gmra.mxu0 %vm525_vm1, %v4200_v30 }
  0xb3   : > { %v3869_v33 = vpop.eup %3868  ;;  %3663 = vmatpush3.msra.mxu0 %v519_v31  ;;  %3664 = vmatprep.mubr.msk.f32.mxu0 %vm4054_vm2, %v4053_v17 }
  0xb4   : > { %v3871_v34 = vpop.eup %3870  ;;  %v4209_v35 = vmul.f32 %v3869_v33, %v510_v3  ;;  %3672 = vmatprep.subr.mxu0 %v4053_v17 }
  0xb5   : > { %v4219_v38 = vmul.f32 %v3871_v34, %v4169_v6 }
  0xb6   : > { %3660 = vmatmul.mubr.msk.f32.vlgmr.msra.gmra.mxu1 %vm525_vm1, %v4209_v35  ;;  %3665 = vmatmul.mubr.msk.f32.vlgmr.msra.gmra.mxu0 %vm525_vm1, %v4205_v32 }
  0xb7   : > { %v3873_v39 = vpop.eup %3872  ;;  %3668 = vmatpush3.msra.mxu1 %v520_v36  ;;  %3669 = vmatprep.mubr.msk.f32.mxu1 %vm4054_vm2, %v4053_v17 }
  0xb8   : > { %v3875_v40 = vpop.eup %3874  ;;  %3673 = vmatpush3.msra.mxu0 %v521_v37  ;;  %3674 = vmatprep.mubr.msk.f32.mxu0 %vm4054_vm2, %v4053_v17  ;;  %v4226_v41 = vmul.f32 %v3873_v39, %v4174_v9 }
  0xb9   : > { %3677 = vmatprep.subr.mxu1 %v4053_v17  ;;  %3682 = vmatprep.subr.mxu0 %v4053_v17  ;;  %v4237_v44 = vmul.f32 %v3875_v40, %v4176_v10 }
  0xba   : > { %3670 = vmatmul.mubr.msk.f32.vlgmr.msra.gmra.mxu1 %vm525_vm1, %v4219_v38  ;;  %3675 = vmatmul.mubr.msk.f32.vlgmr.msra.gmra.mxu0 %vm525_vm1, %v4226_v41 }
  0xbb   : > { %v3877_v45 = vpop.eup %3876  ;;  %3678 = vmatpush3.msra.mxu1 %v522_v42  ;;  %3679 = vmatprep.mubr.msk.f32.mxu1 %vm4054_vm2, %v4053_v17 }
  0xbc   : > { %v3879_v46 = vpop.eup %3878  ;;  %3683 = vmatpush3.msra.mxu0 %v523_v43  ;;  %3684 = vmatprep.mubr.msk.f32.mxu0 %vm4054_vm2, %v4053_v17  ;;  %v4244_v47 = vmul.f32 %v3877_v45, %v4182_v13 }
  0xbd   : > { %3687 = vmatprep.subr.mxu1 %v4053_v17  ;;  %v4253_v49 = vmul.f32 %v3879_v46, %v4184_v14  ;;  %3692 = vmatprep.subr.mxu0 %v1151_v50 }
  0xbe   : > { %3680 = vmatmul.mubr.msk.f32.vlgmr.msra.gmra.mxu1 %vm525_vm1, %v4237_v44  ;;  %3685 = vmatmul.mubr.msk.f32.vlgmr.msra.gmra.mxu0 %vm525_vm1, %v4244_v47 }
  0xbf   : > { %3688 = vmatpush3.msra.mxu1 %v524_v48  ;;  %3689 = vmatprep.mubr.msk.f32.mxu1 %vm4054_vm2, %v4053_v17 }
  0xc0   : > { %3708 = vmatprep.subr.mxu1 %v4053_v17  ;;  %3693 = vmatpush3.msra.mxu0 %v1151_v50 }
  0xc1   : > { %3694 = vmatprep.subr.mxu0 %v1150_v51 }
  0xc2   : > { %3690 = vmatmul.mubr.msk.f32.vlgmr.msra.gmra.mxu1 %vm525_vm1, %v4253_v49  ;;  %3695 = vmatpush3.msra.mxu0 %v1150_v51 }
  0xc3   : > { %3710 = vmatprep.mubr.msk.f32.mxu1 %vm4054_vm2, %v4053_v17  ;;  %3728 = vmatprep.subr.mxu0 %v4053_v17 }
 0x172   : > { %v635_v52 = vpop.f32.mrf.mxu0 }
 0x173   : > { %3696 = vmatprep.mubr.msk.f32.mxu0 %vm1159_vm3, %v635_v52 }
 0x174   : > { %v3656_v53 = vpop.f32.mrf.mxu0 }
 0x176   : > { %v708_v54 = vpop.f32.mrf.mxu1  ;;  %v781_v55 = vpop.f32.mrf.mxu0 }
 0x177   : > { %3697 = vmatmul.mubr.msk.f32.vlgmr.msra.gmra.mxu0 %vm1159_vm3, %v708_v54 }
 0x178   : > { %v3661_v56 = vpop.f32.mrf.mxu1  ;;  %v3666_v57 = vpop.f32.mrf.mxu0  ;;  %3699 = vmatprep.mubr.msk.f32.mxu0 %vm1159_vm3, %v781_v55 }
 0x17a   : > { %v854_v58 = vpop.f32.mrf.mxu1  ;;  %v927_v59 = vpop.f32.mrf.mxu0 }
 0x17b   : > { %3700 = vmatmul.mubr.msk.f32.gmra.mxu0 %vm1159_vm3, %v854_v58 }
 0x17c   : > { %v3671_v60 = vpop.f32.mrf.mxu1  ;;  %3702 = vmatprep.mubr.msk.f32.mxu0 %vm1159_vm3, %v927_v59  ;;  %v3676_v61 = vpop.f32.mrf.mxu0 }
 0x17e   : > { %v1000_v62 = vpop.f32.mrf.mxu1  ;;  %v1073_v63 = vpop.f32.mrf.mxu0 }
 0x17f   : > { %3703 = vmatmul.mubr.msk.f32.gmra.mxu0 %vm1159_vm3, %v1000_v62 }
 0x180   : > { %v3681_v0 = vpop.f32.mrf.mxu1  ;;  %3705 = vmatprep.mubr.msk.f32.mxu0 %vm1159_vm3, %v1073_v63  ;;  %v3686_v1 = vpop.f32.mrf.mxu0 }
 0x182   : > { %v1146_v2 = vpop.f32.mrf.mxu1 }
 0x183   : > { %3706 = vmatmul.mubr.msk.f32.gmra.mxu0 %vm1159_vm3, %v1146_v2 }
 0x184   : > { %v3691_v3 = vpop.f32.mrf.mxu1  ;;  %3730 = vmatprep.mubr.msk.f32.mxu0 %vm4054_vm2, %v4053_v17 }
 0x237   : > { %v3698_v5 = vpop.f32.mrf.mxu0 }
 0x238   : > { %v1256_v6 = vadd.f32 %v3698_v5, %v3486_v4  ;;  %v1900_v5 = vld [vmem:[%s4695_s4 + $0x18] sm:$0xff] }
 0x239   : > { %v1250_v7 = vpop.f32.mrf.mxu0 }
 0x23a   : > { %v1298_v8 = vmin.f32 %v1256_v6, 0.0  ;;  %v1251_v9 = vadd.f32 %v3486_v4, %v1250_v7  ;;  %vm1290_vm5 = vcmp.gt.f32.partialorder %v1256_v6, 0.0 }
 0x23b   : > { %v3701_v10 = vpop.f32.mrf.mxu0 }
 0x23c   : > { %v1307_v11 = vmul.f32 1.442695, %v1298_v8  ;;  %v1297_v12 = vmin.f32 %v1251_v9, 0.0  ;;  %v4282_v13 = vadd.f32 %v3701_v10, %v3486_v4  ;;  %vm1289_vm4 = vcmp.gt.f32.partialorder %v1251_v9, 0.0  ;;  %v1898_v8 = vld [vmem:[%s4695_s4 + $0x8] sm:$0xff] }
 0x23d   : > { %v1260_v14 = vpop.f32.mrf.mxu0 }
 0x23e   : > { %3880 = vpow2.f32 %v1307_v11  ;;  %v1305_v15 = vmul.f32 1.442695, %v1297_v12  ;;  %v1300_v16 = vmin.f32 %v4282_v13, 0.0  ;;  %v1261_v18 = vadd.f32 %v3486_v4, %v1260_v14 }
 0x23f   : > { %v3704_v19 = vpop.f32.mrf.mxu0  ;;  %vm1292_vm8 = vcmp.gt.f32.partialorder %v4282_v13, 0.0 }
 0x240   : > { %3882 = vpow2.f32 %v1305_v15  ;;  %v4285_v20 = vadd.f32 %v3704_v19, %v3486_v4  ;;  %v1299_v21 = vmin.f32 %v1261_v18, 0.0  ;;  %v1311_v23 = vmul.f32 1.442695, %v1300_v16 }
 0x241   : > { %v1270_v22 = vpop.f32.mrf.mxu0  ;;  %vm1291_vm6 = vcmp.gt.f32.partialorder %v1261_v18, 0.0 }
 0x242   : > { %v1302_v24 = vmin.f32 %v4285_v20, 0.0  ;;  %v1271_v25 = vadd.f32 %v3486_v4, %v1270_v22  ;;  %v1309_v26 = vmul.f32 1.442695, %v1299_v21  ;;  %vm1294_vm10 = vcmp.gt.f32.partialorder %v4285_v20, 0.0 }
 0x243   : > { %v3707_v27 = vpop.f32.mrf.mxu0 }
 0x244   : > { %v1301_v28 = vmin.f32 %v1271_v25, 0.0  ;;  %v4288_v29 = vadd.f32 %v3707_v27, %v3486_v4  ;;  %3884 = vpow2.f32 %v1309_v26  ;;  %v1315_v33 = vmul.f32 1.442695, %v1302_v24  ;;  %v3511_v27 = vld [vmem:[%s4696_s5] ss:$0 sm:$0xff] }
 0x245   : > { %v1280_v31 = vpop.f32.mrf.mxu0  ;;  %3886 = vpow2.f32 %v1311_v23  ;;  %vm1293_vm7 = vcmp.gt.f32.partialorder %v1271_v25, 0.0 }
 0x246   : > { %v1313_v34 = vmul.f32 1.442695, %v1301_v28  ;;  %v1304_v36 = vmin.f32 %v4288_v29, 0.0  ;;  %v1281_v37 = vadd.f32 %v3486_v4, %v1280_v31  ;;  %vm1296_vm11 = vcmp.gt.f32.partialorder %v4288_v29, 0.0 }
 0x248   : > { %3888 = vpow2.f32 %v1313_v34  ;;  %v1303_v39 = vmin.f32 %v1281_v37, 0.0  ;;  %v1319_v40 = vmul.f32 1.442695, %v1304_v36  ;;  %vm1295_vm9 = vcmp.gt.f32.partialorder %v1281_v37, 0.0 }
 0x249   : > { %3890 = vpow2.f32 %v1315_v33 }
 0x24a   : > { %v1317_v43 = vmul.f32 1.442695, %v1303_v39 }
 0x24b   : > { %v3881_v42 = vpop.eup %3880 }
 0x24c   : > { %3892 = vpow2.f32 %v1317_v43  ;;  %v3496_v48 = vadd.f32 -1.0, %v3881_v42 }
 0x24d   : > { %v3883_v45 = vpop.eup %3882  ;;  %3894 = vpow2.f32 %v1319_v40 }
 0x24e   : > { %v3495_v46 = vadd.f32 -1.0, %v3883_v45  ;;  %v4297_v52 = vsel %vm1290_vm5, %v1256_v6, %v3496_v48  ;;  %v1899_v6 = vld [vmem:[%s4695_s4 + $0x10] sm:$0xff] }
 0x250   : > { %v4291_v50 = vsel %vm1289_vm4, %v1251_v9, %v3495_v46  ;;  %v1897_v9 = vld [vmem:[%s4695_s4] sm:$0xff] }
 0x251   : > { %3709 = vmatpush3.msra.mxu1 %v4291_v50  ;;  %v3885_v51 = vpop.eup %3884 }
 0x252   : > { %3711 = vmatmul.mubr.msk.f32.vlgmr.msra.gmra.mxu1 %vm525_vm1, %v4200_v30  ;;  %3713 = vmatprep.subr.mxu1 %v4053_v17  ;;  %v3887_v53 = vpop.eup %3886  ;;  %v3497_v54 = vadd.f32 -1.0, %v3885_v51 }
 0x253   : > { %3714 = vmatpush3.msra.mxu1 %v4297_v52  ;;  %3715 = vmatprep.mubr.msk.f32.mxu1 %vm4054_vm2, %v4053_v17  ;;  %v3498_v58 = vadd.f32 -1.0, %v3887_v53 }
 0x254   : > { %3718 = vmatprep.subr.mxu1 %v4053_v17  ;;  %v4303_v56 = vsel %vm1291_vm6, %v1261_v18, %v3497_v54 }
 0x255   : > { %v3889_v55 = vpop.eup %3888  ;;  %v4318_v62 = vsel %vm1292_vm8, %v4282_v13, %v3498_v58 }
 0x256   : > { %3716 = vmatmul.mubr.msk.f32.vlgmr.msra.gmra.mxu1 %vm525_vm1, %v4209_v35  ;;  %v3499_v57 = vadd.f32 -1.0, %v3889_v55  ;;  %v3891_v59 = vpop.eup %3890 }
 0x257   : > { %3719 = vmatpush3.msra.mxu1 %v4303_v56  ;;  %3720 = vmatprep.mubr.msk.f32.mxu1 %vm4054_vm2, %v4053_v17  ;;  %v3500_v63 = vadd.f32 -1.0, %v3891_v59 }
 0x258   : > { %3723 = vmatprep.subr.mxu1 %v4053_v17  ;;  %v4311_v60 = vsel %vm1293_vm7, %v1271_v25, %v3499_v57 }
 0x259   : > { %3729 = vmatpush3.msra.mxu0 %v4311_v60  ;;  %v3893_v61 = vpop.eup %3892  ;;  %v4336_v3 = vsel %vm1294_vm10, %v4285_v20, %v3500_v63 }
 0x25a   : > { %3721 = vmatmul.mubr.msk.f32.vlgmr.msra.gmra.mxu1 %vm525_vm1, %v4205_v32  ;;  %3731 = vmatmul.mubr.msk.f32.vlgmr.msra.gmra.mxu0 %vm525_vm1, %v4226_v41  ;;  %v3895_v0 = vpop.eup %3894  ;;  %v3501_v1 = vadd.f32 -1.0, %v3893_v61 }
 0x25b   : > { %3724 = vmatpush3.msra.mxu1 %v4318_v62  ;;  %3738 = vmatprep.subr.mxu0 %v4053_v17  ;;  %v3502_v4 = vadd.f32 -1.0, %v3895_v0 }
 0x25c   : > { %3725 = vmatprep.mubr.msk.f32.mxu1 %vm4054_vm2, %v4053_v17  ;;  %3733 = vmatprep.subr.mxu1 %v4053_v17  ;;  %v4328_v2 = vsel %vm1295_vm9, %v1281_v37, %v3501_v1 }
 0x25d   : > { %3740 = vmatprep.mubr.msk.f32.mxu0 %vm4054_vm2, %v4053_v17  ;;  %3739 = vmatpush3.msra.mxu0 %v4328_v2  ;;  %v4354_v7 = vsel %vm1296_vm11, %v4288_v29, %v3502_v4 }
 0x25e   : > { %3726 = vmatmul.mubr.msk.f32.vlgmr.msra.gmra.mxu1 %vm525_vm1, %v4219_v38  ;;  %3741 = vmatmul.mubr.msk.f32.vlgmr.msra.gmra.mxu0 %vm525_vm1, %v4244_v47 }
 0x25f   : > { %3734 = vmatpush3.msra.mxu1 %v4336_v3  ;;  %3735 = vmatprep.mubr.msk.f32.mxu1 %vm4054_vm2, %v4053_v17 }
 0x260   : > { %3743 = vmatprep.subr.mxu1 %v4053_v17  ;;  %3748 = vmatprep.subr.mxu0 %v1900_v5 }
 0x261   : > { %3749 = vmatpush3.msra.mxu0 %v1900_v5 }
 0x262   : > { %3736 = vmatmul.mubr.msk.f32.vlgmr.msra.gmra.mxu1 %vm525_vm1, %v4237_v44  ;;  %3750 = vmatprep.subr.mxu0 %v1899_v6 }
 0x263   : > { %3744 = vmatpush3.msra.mxu1 %v4354_v7  ;;  %3745 = vmatprep.mubr.msk.f32.mxu1 %vm4054_vm2, %v4053_v17 }
 0x264   : > { %3768 = vmatprep.subr.mxu1 %v4053_v17  ;;  %3751 = vmatpush3.msra.mxu0 %v1899_v6 }
 0x265   : > { %3752 = vmatprep.subr.mxu0 %v1898_v8 }
 0x266   : > { %3746 = vmatmul.mubr.msk.f32.vlgmr.msra.gmra.mxu1 %vm525_vm1, %v4253_v49  ;;  %3753 = vmatpush3.msra.mxu0 %v1898_v8 }
 0x267   : > { %3770 = vmatprep.mubr.msk.f32.mxu1 %vm4054_vm2, %v4053_v17  ;;  %3754 = vmatprep.subr.mxu0 %v1897_v9 }
 0x268   : > { %3755 = vmatpush3.msra.mxu0 %v1897_v9 }
 0x269   : > { %3793 = vmatprep.subr.mxu0 %v4053_v17 }
 0x312   : > { %v1403_v10 = vpop.f32.mrf.mxu1 }
 0x313   : > { %3756 = vmatprep.mubr.msk.f32.mxu0 %vm1908_vm12, %v1403_v10 }
 0x314   : > { %v3712_v11 = vpop.f32.mrf.mxu1 }
 0x315   : > { %v4392_v11 = vstv %s2086_s18 }
 0x316   : > { %v1473_v12 = vpop.f32.mrf.mxu1 }
 0x317   : > { %3757 = vmatmul.mubr.msk.f32.vlgmr.msra.gmra.mxu0 %vm1908_vm12, %v1473_v12 }
 0x318   : > { %v3717_v13 = vpop.f32.mrf.mxu1 }
 0x31a   : > { %v1543_v14 = vpop.f32.mrf.mxu1  ;;  %v1683_v15 = vpop.f32.mrf.mxu0 }
 0x31b   : > { %3759 = vmatprep.mubr.msk.f32.mxu0 %vm1908_vm12, %v1543_v14 }
 0x31c   : > { %v3722_v16 = vpop.f32.mrf.mxu1  ;;  %v3732_v18 = vpop.f32.mrf.mxu0 }
 0x31e   : > { %v1613_v19 = vpop.f32.mrf.mxu1  ;;  %v1823_v20 = vpop.f32.mrf.mxu0 }
 0x31f   : > { %3760 = vmatmul.mubr.msk.f32.gmra.mxu0 %vm1908_vm12, %v1613_v19 }
 0x320   : > { %v3727_v21 = vpop.f32.mrf.mxu1  ;;  %3762 = vmatprep.mubr.msk.f32.mxu0 %vm1908_vm12, %v1683_v15  ;;  %v3742_v22 = vpop.f32.mrf.mxu0 }
 0x322   : > { %v1753_v23 = vpop.f32.mrf.mxu1 }
 0x323   : > { %3763 = vmatmul.mubr.msk.f32.gmra.mxu0 %vm1908_vm12, %v1753_v23 }
 0x324   : > { %v3737_v24 = vpop.f32.mrf.mxu1  ;;  %3765 = vmatprep.mubr.msk.f32.mxu0 %vm1908_vm12, %v1823_v20 }
 0x326   : > { %v1893_v25 = vpop.f32.mrf.mxu1 }
 0x327   : > { %3766 = vmatmul.mubr.msk.f32.gmra.mxu0 %vm1908_vm12, %v1893_v25 }
 0x328   : > { %v3747_v26 = vpop.f32.mrf.mxu1  ;;  %3795 = vmatprep.mubr.msk.f32.mxu0 %vm4054_vm2, %v4053_v17 }
 0x3d7   : > { %v3758_v28 = vpop.f32.mrf.mxu0 }
 0x3d8   : > { %v2005_v29 = vadd.f32 %v3758_v28, %v3511_v27 }
 0x3d9   : > { %v1999_v31 = vpop.f32.mrf.mxu0 }
 0x3da   : > { %v2047_v33 = vmin.f32 %v2005_v29, 0.0  ;;  %v2000_v34 = vadd.f32 %v3511_v27, %v1999_v31  ;;  %vm2039_vm13 = vcmp.gt.f32.partialorder %v2005_v29, 0.0 }
 0x3dc   : > { %v2056_v36 = vmul.f32 1.442695, %v2047_v33  ;;  %v2046_v37 = vmin.f32 %v2000_v34, 0.0  ;;  %vm2038_vm14 = vcmp.gt.f32.partialorder %v2000_v34, 0.0 }
 0x3de   : > { %3896 = vpow2.f32 %v2056_v36  ;;  %v2054_v39 = vmul.f32 1.442695, %v2046_v37 }
 0x3df   : > { %v3761_v40 = vpop.f32.mrf.mxu0 }
 0x3e0   : > { %3898 = vpow2.f32 %v2054_v39  ;;  %v2015_v42 = vadd.f32 %v3761_v40, %v3511_v27 }
 0x3e1   : > { %v2009_v43 = vpop.f32.mrf.mxu0 }
 0x3e2   : > { %v2049_v45 = vmin.f32 %v2015_v42, 0.0  ;;  %v2010_v46 = vadd.f32 %v3511_v27, %v2009_v43  ;;  %vm2041_vm15 = vcmp.gt.f32.partialorder %v2015_v42, 0.0 }
 0x3e3   : > { %v3764_v48 = vpop.f32.mrf.mxu0 }
 0x3e4   : > { %v2060_v51 = vmul.f32 1.442695, %v2049_v45  ;;  %v2048_v53 = vmin.f32 %v2010_v46, 0.0  ;;  %v2025_v54 = vadd.f32 %v3764_v48, %v3511_v27  ;;  %vm2040_vm0 = vcmp.gt.f32.partialorder %v2010_v46, 0.0 }
 0x3e5   : > { %v2019_v55 = vpop.f32.mrf.mxu0 }
 0x3e6   : > { %3900 = vpow2.f32 %v2060_v51  ;;  %v2058_v57 = vmul.f32 1.442695, %v2048_v53  ;;  %v2051_v58 = vmin.f32 %v2025_v54, 0.0  ;;  %v4384_v59 = vadd.f32 %v3511_v27, %v2019_v55 }
 0x3e7   : > { %v3767_v61 = vpop.f32.mrf.mxu0  ;;  %vm2043_vm3 = vcmp.gt.f32.partialorder %v2025_v54, 0.0 }
 0x3e8   : > { %3902 = vpow2.f32 %v2058_v57  ;;  %v2064_v63 = vmul.f32 1.442695, %v2051_v58  ;;  %v4386_v0 = vadd.f32 %v3767_v61, %v3511_v27  ;;  %v2050_v1 = vmin.f32 %v4384_v59, 0.0 }
 0x3e9   : > { %v2029_v4 = vpop.f32.mrf.mxu0  ;;  %vm2042_vm4 = vcmp.gt.f32.partialorder %v4384_v59, 0.0 }
 0x3ea   : > { %3904 = vpow2.f32 %v2064_v63  ;;  %v2053_v5 = vmin.f32 %v4386_v0, 0.0  ;;  %v4390_v6 = vadd.f32 %v3511_v27, %v2029_v4  ;;  %v2062_v9 = vmul.f32 1.442695, %v2050_v1 }
 0x3eb   : > { %v3897_v8 = vpop.eup %3896  ;;  %vm2045_vm5 = vcmp.gt.f32.partialorder %v4386_v0, 0.0 }
 0x3ec   : > { %v3521_v10 = vadd.f32 -1.0, %v3897_v8  ;;  %v2068_v12 = vmul.f32 1.442695, %v2053_v5  ;;  %v2052_v13 = vmin.f32 %v4390_v6, 0.0  ;;  %3906 = vpow2.f32 %v2062_v9 }
 0x3ed   : > { %v3899_v14 = vpop.eup %3898  ;;  %vm2044_vm6 = vcmp.gt.f32.partialorder %v4390_v6, 0.0 }
 0x3ee   : > { %v4395_v15 = vsel %vm2039_vm13, %v2005_v29, %v3521_v10  ;;  %v3520_v16 = vadd.f32 -1.0, %v3899_v14  ;;  %3908 = vpow2.f32 %v2068_v12  ;;  %v2066_v18 = vmul.f32 1.442695, %v2052_v13 }
 0x3ef   : > { %v2089_v19 = vmul.f32 %v4392_v11, %v4395_v15  ;;  %v2969_v20 = vmul.f32 %v4395_v15, %v4395_v15 }
 0x3f0   : > { %v4401_v21 = vsel %vm2038_vm14, %v2000_v34, %v3520_v16  ;;  %3910 = vpow2.f32 %v2066_v18 }
 0x3f1   : > { %v3529_v22 = vmul.f32 -1.442695, %v2089_v19  ;;  %v2088_v23 = vmul.f32 %v4392_v11, %v4401_v21  ;;  %2986 = vrot.lane.b32.xlu1 %v2969_v20, %s4055_s19  ;;  %v2968_v24 = vmul.f32 %v4401_v21, %v4401_v21 }
 0x3f3   : > { %v3901_v25 = vpop.eup %3900  ;;  %3912 = vpow2.f32 %v3529_v22  ;;  %v3528_v26 = vmul.f32 -1.442695, %v2088_v23  ;;  %2984 = vrot.lane.b32.xlu0 %v2968_v24, %s4055_s19 }
 0x3f4   : > { %v3523_v27 = vadd.f32 -1.0, %v3901_v25 }
 0x3f5   : > { %v3903_v28 = vpop.eup %3902  ;;  %3914 = vpow2.f32 %v3528_v26 }
 0x3f6   : > { %v4409_v29 = vsel %vm2041_vm15, %v2015_v42, %v3523_v27  ;;  %v3522_v31 = vadd.f32 -1.0, %v3903_v28  ;;  %vm2934_vm15 = vcmask 1041409  }
 0x3f7   : > { %v3905_v33 = vpop.eup %3904  ;;  %v2091_v34 = vmul.f32 %v4392_v11, %v4409_v29  ;;  %v2971_v61 = vmul.f32 %v4409_v29, %v4409_v29 }
 0x3f8   : > { %v4413_v36 = vsel %vm2040_vm0, %v2010_v46, %v3522_v31  ;;  %v3525_v37 = vadd.f32 -1.0, %v3905_v33  ;;  %vm2936_vm0 = vcmask 1042434  }
 0x3f9   : > { %v3531_v39 = vmul.f32 -1.442695, %v2091_v34  ;;  %v2090_v40 = vmul.f32 %v4392_v11, %v4413_v36  ;;  %v2970_v43 = vmul.f32 %v4413_v36, %v4413_v36  ;;  %v3907_v45 = vpop.eup %3906 }
 0x3fa   : > { %v4419_v42 = vsel %vm2043_vm3, %v2025_v54, %v3525_v37  ;;  %v3524_v46 = vadd.f32 -1.0, %v3907_v45  ;;  %vm2938_vm3 = vcmask 1043459  }
 0x3fb   : > { %v3909_v48 = vpop.eup %3908  ;;  %3916 = vpow2.f32 %v3531_v39  ;;  %v3530_v51 = vmul.f32 -1.442695, %v2090_v40  ;;  %v2093_v53 = vmul.f32 %v4392_v11, %v4419_v42  ;;  %2988 = vrot.lane.b32.xlu1 %v2970_v43, %s4055_s19  ;;  %v2973_v13 = vmul.f32 %v4419_v42, %v4419_v42 }
 0x3fc   : > { %v3527_v55 = vadd.f32 -1.0, %v3909_v48  ;;  %v4427_v54 = vsel %vm2042_vm4, %v4384_v59, %v3524_v46  ;;  %vm2940_vm4 = vcmask 1044484  }
 0x3fd   : > { %v3911_v57 = vpop.eup %3910  ;;  %3918 = vpow2.f32 %v3530_v51  ;;  %v3533_v58 = vmul.f32 -1.442695, %v2093_v53  ;;  %v2092_v63 = vmul.f32 %v4392_v11, %v4427_v54  ;;  %v2972_v5 = vmul.f32 %v4427_v54, %v4427_v54 }
 0x3fe   : > { %v4434_v1 = vsel %vm2045_vm5, %v4386_v0, %v3527_v55  ;;  %v3526_v4 = vadd.f32 -1.0, %v3911_v57  ;;  %v2952_v53 = vmul.f32 2.0, %v4401_v21  ;;  %vm2942_vm5 = vcmask 1045509  }
 0x3ff   : > { %3920 = vpow2.f32 %v3533_v58  ;;  %v2095_v8 = vmul.f32 %v4392_v11, %v4434_v1  ;;  %2990 = vrot.lane.b32.xlu1 %v2971_v61, %s4055_s19  ;;  %v3532_v9 = vmul.f32 -1.442695, %v2092_v63  ;;  %2992 = vrot.lane.b32.xlu0 %v2972_v5, %s4055_s19  ;;  %v2955_v61 = vmul.f32 2.0, %v4409_v29 }
 0x400   : > { %v3913_v59 = vpop.eup %3912  ;;  %v4443_v10 = vsel %vm2044_vm6, %v4390_v6, %v3526_v4  ;;  %v2975_v6 = vmul.f32 %v4434_v1, %v4434_v1  ;;  %v3016_v58 = vmul.f32 1.442695, %v2952_v53  ;;  %v2957_v5 = vmul.f32 2.0, %v4419_v42 }
 0x401   : > { %v3535_v0 = vmul.f32 -1.442695, %v2095_v8  ;;  %v2094_v12 = vmul.f32 %v4392_v11, %v4443_v10  ;;  %v2974_v14 = vmul.f32 %v4443_v10, %v4443_v10  ;;  %3922 = vpow2.f32 %v3532_v9 }
 0x402   : > { %v3915_v16 = vpop.eup %3914  ;;  %v2121_v18 = vadd.f32 1.0, %v3913_v59  ;;  %v4056_v11 = vmov 0   ;;  %v3022_v21 = vmul.f32 1.442695, %v2955_v61  ;;  %v2958_v9 = vmul.f32 2.0, %v4443_v10 }
 0x403   : > { %v2120_v19 = vadd.f32 1.0, %v3915_v16  ;;  %v3534_v20 = vmul.f32 -1.442695, %v2094_v12  ;;  %2994 = vrot.lane.b32.xlu1 %v2973_v13, %s4055_s19  ;;  %3924 = vpow2.f32 %v3535_v0  ;;  %2996 = vrot.lane.b32.xlu0 %v2974_v14, %s4055_s19  ;;  %v3026_v12 = vmul.f32 1.442695, %v2957_v5 }
 0x404   : > { %3862 = vset.pattern.permute.xlu0 %v4056_v11  ;;  %3863 = vset.pattern.permute.xlu1 %v4056_v11  ;;  %v2959_v13 = vmul.f32 2.0, %v4434_v1  ;;  %v3028_v42 = vmul.f32 1.442695, %v2958_v9  ;;  %vm2944_vm6 = vcmask 1046534  }
 0x405   : > { %3926 = vrcp.f32 %v2120_v19 }
 0x406   : > { %3928 = vpow2.f32 %v3534_v20  ;;  %v3030_v11 = vmul.f32 1.442695, %v2959_v13 }
 0x407   : > { %3930 = vrcp.f32 %v2121_v18  ;;  %2998 = vrot.lane.b32.xlu1 %v2975_v6, %s4055_s19  ;;  %v2960_v6 = vadd.f32 1.0, %v2952_v53 }
 0x408   : > { %v3917_v22 = vpop.eup %3916 }
 0x409   : > { %v2123_v24 = vadd.f32 1.0, %v3917_v22 }
 0x40a   : > { %v3919_v23 = vpop.eup %3918 }
 0x40b   : > { %v2122_v25 = vadd.f32 1.0, %v3919_v23 }
 0x40c   : > { %v3921_v26 = vpop.eup %3920 }
 0x40d   : > { %3932 = vrcp.f32 %v2122_v25  ;;  %v2125_v27 = vadd.f32 1.0, %v3921_v26 }
 0x40e   : > { %3934 = vrcp.f32 %v2123_v24  ;;  %v3923_v28 = vpop.eup %3922 }
 0x40f   : > { %3936 = vrcp.f32 %v2125_v27  ;;  %v2124_v31 = vadd.f32 1.0, %v3923_v28  ;;  %v2963_v27 = vadd.f32 1.0, %v2955_v61 }
 0x410   : > { %v3925_v33 = vpop.eup %3924 }
 0x411   : > { %3938 = vrcp.f32 %v2124_v31  ;;  %v2127_v37 = vadd.f32 1.0, %v3925_v33 }
 0x412   : > { %v4457_v34 = vpop.eup %3926 }
 0x413   : > { %v3929_v39 = vpop.eup %3928  ;;  %3769 = vmatpush3.msra.mxu1 %v4457_v34  ;;  %3940 = vrcp.f32 %v2127_v37 }
 0x414   : > { %v4460_v40 = vpop.eup %3930  ;;  %v2126_v43 = vadd.f32 1.0, %v3929_v39  ;;  %3771 = vmatmul.mubr.msk.f32.vlgmr.msra.gmra.mxu1 %vm525_vm1, %v4200_v30  ;;  %3773 = vmatprep.subr.mxu1 %v4053_v17 }
 0x415   : > { %3774 = vmatpush3.msra.mxu1 %v4460_v40  ;;  %3775 = vmatprep.mubr.msk.f32.mxu1 %vm4054_vm2, %v4053_v17 }
 0x416   : > { %3942 = vrcp.f32 %v2126_v43  ;;  %3778 = vmatprep.subr.mxu1 %v4053_v17 }
 0x418   : > { %3776 = vmatmul.mubr.msk.f32.vlgmr.msra.gmra.mxu1 %vm525_vm1, %v4209_v35 }
 0x419   : > { %3780 = vmatprep.mubr.msk.f32.mxu1 %vm4054_vm2, %v4053_v17 }
 0x41a   : > { %v4473_v45 = vpop.eup %3932 }
 0x41b   : > { %v4475_v48 = vpop.eup %3934  ;;  %3779 = vmatpush3.msra.mxu1 %v4473_v45 }
 0x41c   : > { %v4478_v30 = vpop.eup %3936  ;;  %3781 = vmatmul.mubr.msk.f32.vlgmr.msra.gmra.mxu1 %vm525_vm1, %v4205_v32  ;;  %3783 = vmatprep.subr.mxu1 %v4053_v17 }
 0x41d   : > { %3784 = vmatpush3.msra.mxu1 %v4475_v48  ;;  %3794 = vmatpush3.msra.mxu0 %v4478_v30 }
 0x41e   : > { %3796 = vmatmul.mubr.msk.f32.vlgmr.msra.gmra.mxu0 %vm525_vm1, %v4237_v44  ;;  %3785 = vmatprep.mubr.msk.f32.mxu1 %vm4054_vm2, %v4053_v17  ;;  %v4489_v35 = vpop.eup %3938 }
 0x41f   : > { %3788 = vmatprep.subr.mxu1 %v4053_v17  ;;  %3803 = vmatprep.subr.mxu0 %v4053_v17 }
 0x420   : > { %3786 = vmatmul.mubr.msk.f32.vlgmr.msra.gmra.mxu1 %vm525_vm1, %v4219_v38  ;;  %3805 = vmatprep.mubr.msk.f32.mxu0 %vm4054_vm2, %v4053_v17  ;;  %v4497_v32 = vpop.eup %3940  ;;  %v2953_v38 = vmul.f32 2.0, %v4395_v15 }
 0x421   : > { %3789 = vmatpush3.msra.mxu1 %v4489_v35  ;;  %3790 = vmatprep.mubr.msk.f32.mxu1 %vm4054_vm2, %v4053_v17 }
 0x422   : > { %3804 = vmatpush3.msra.mxu0 %v4497_v32  ;;  %3798 = vmatprep.subr.mxu1 %v4053_v17  ;;  %v3018_v55 = vmul.f32 1.442695, %v2953_v38  ;;  %v2961_v20 = vadd.f32 1.0, %v2953_v38 }
 0x423   : > { %v4504_v44 = vpop.eup %3942  ;;  %3806 = vmatmul.mubr.msk.f32.vlgmr.msra.gmra.mxu0 %vm525_vm1, %v4253_v49  ;;  %v2954_v49 = vmul.f32 2.0, %v4413_v36 }
 0x424   : > { %3791 = vmatmul.mubr.msk.f32.vlgmr.msra.gmra.mxu1 %vm525_vm1, %v4226_v41  ;;  %3944 = vpow2.f32 %v3018_v55  ;;  %v2965_v55 = vadd.f32 1.0, %v2957_v5 }
 0x425   : > { %3799 = vmatpush3.msra.mxu1 %v4504_v44  ;;  %3800 = vmatprep.mubr.msk.f32.mxu1 %vm4054_vm2, %v4053_v17  ;;  %v3020_v63 = vmul.f32 1.442695, %v2954_v49  ;;  %3946 = vpow2.f32 %v3016_v58  ;;  %v2962_v26 = vadd.f32 1.0, %v2954_v49 }
 0x427   : > { %3948 = vpow2.f32 %v3020_v63 }
 0x428   : > { %3801 = vmatmul.mubr.msk.f32.vlgmr.msra.gmra.mxu1 %vm525_vm1, %v4244_v47  ;;  %v2956_v47 = vmul.f32 2.0, %v4427_v54  ;;  %3950 = vpow2.f32 %v3022_v21  ;;  %v2966_v21 = vadd.f32 1.0, %v2958_v9  ;;  %v3544_v9 = vld [vmem:[%s4697_s6] ss:$0 sm:$0xff]  ;;  %vm3073_vm1 = vcmask 7168  }
 0x42a   : > { %v3024_v59 = vmul.f32 1.442695, %v2956_v47 }
 0x42c   : > { %3952 = vpow2.f32 %v3024_v59 }
 0x42d   : > { %3954 = vpow2.f32 %v3026_v12 }
 0x42e   : > { %3956 = vpow2.f32 %v3028_v42 }
 0x42f   : > { %3958 = vpow2.f32 %v3030_v11 }
 0x431   : > { %v3945_v25 = vpop.eup %3944 }
 0x432   : > { %v3947_v31 = vpop.eup %3946 }
 0x434   : > { %v3949_v53 = vpop.eup %3948 }
 0x463   : > { %v2987_v41 = vpop.permute.xlu1 %2986 }
 0x464   : > { %v3009_v23 = vsub.f32 %v2961_v20, %v2987_v41 }
 0x465   : > { %v2985_v14 = vpop.permute.xlu0 %2984 }
 0x466   : > { %v3008_v24 = vsub.f32 %v2960_v6, %v2985_v14  ;;  %v3033_v39 = vsub.f32 %v3009_v23, %v3945_v25 }
 0x468   : > { %v3032_v43 = vsub.f32 %v3008_v24, %v3947_v31 }
 0x46d   : > { %v2989_v4 = vpop.permute.xlu1 %2988 }
 0x46e   : > { %v3010_v38 = vsub.f32 %v2962_v26, %v2989_v4 }
 0x470   : > { %v3034_v49 = vsub.f32 %v3010_v38, %v3949_v53 }
 0x471   : > { %v2991_v18 = vpop.permute.xlu1 %2990  ;;  %v2993_v28 = vpop.permute.xlu0 %2992 }
 0x475   : > { %v2995_v33 = vpop.permute.xlu1 %2994 }
 0x476   : > { %v3013_v61 = vsub.f32 %v2965_v55, %v2995_v33 }
 0x479   : > { %v2999_v63 = vpop.permute.xlu1 %2998 }
 0x4d4   : > { %v2210_v51 = vpop.f32.mrf.mxu1 }
 0x4d5   : > { %2707 = vperm.xlu0 %3862, %v2210_v51   ;;  %v3011_v51 = vsub.f32 %v2963_v27, %v2991_v18 }
 0x4d6   : > { %v3772_v46 = vpop.f32.mrf.mxu1 }
 0x4d7   : > { %v2964_v46 = vadd.f32 1.0, %v2956_v47 }
 0x4d8   : > { %v2280_v57 = vpop.f32.mrf.mxu1 }
 0x4d9   : > { %2712 = vperm.xlu1 %3863, %v2280_v57   ;;  %v3951_v57 = vpop.eup %3950  ;;  %v3012_v58 = vsub.f32 %v2964_v46, %v2993_v28 }
 0x4da   : > { %v3777_v17 = vpop.f32.mrf.mxu1  ;;  %v3035_v41 = vsub.f32 %v3011_v51, %v3951_v57 }
 0x4db   : > { %v2997_v17 = vpop.permute.xlu0 %2996 }
 0x4dc   : > { %v2350_v15 = vpop.f32.mrf.mxu1  ;;  %v3014_v47 = vsub.f32 %v2966_v21, %v2997_v17 }
 0x4dd   : > { %2717 = vperm.xlu1 %3863, %v2350_v15   ;;  %v3953_v15 = vpop.eup %3952 }
 0x4de   : > { %v3782_v8 = vpop.f32.mrf.mxu1  ;;  %v2560_v36 = vpop.f32.mrf.mxu0 }
 0x4df   : > { %v2967_v8 = vadd.f32 1.0, %v2959_v13  ;;  %v3955_v4 = vpop.eup %3954  ;;  %v3545_v13 = vld [vmem:[%s4698_s7] ss:$0 sm:$0xff] }
 0x4e0   : > { %v2420_v29 = vpop.f32.mrf.mxu1  ;;  %v3797_v0 = vpop.f32.mrf.mxu0  ;;  %v3037_v59 = vsub.f32 %v3013_v61, %v3955_v4 }
 0x4e1   : > { %2722 = vperm.xlu0 %3862, %v2420_v29   ;;  %v3015_v5 = vsub.f32 %v2967_v8, %v2999_v63  ;;  %v3957_v29 = vpop.eup %3956 }
 0x4e2   : > { %v3787_v54 = vpop.f32.mrf.mxu1  ;;  %v3959_v0 = vpop.eup %3958  ;;  %v3038_v12 = vsub.f32 %v3014_v47, %v3957_v29 }
 0x4e3   : > { %v2700_v16 = vpop.f32.mrf.mxu0  ;;  %v3039_v54 = vsub.f32 %v3015_v5, %v3959_v0 }
 0x4e4   : > { %v2490_v19 = vpop.f32.mrf.mxu1 }
 0x4e5   : > { %v3807_v22 = vpop.f32.mrf.mxu0  ;;  %2732 = vperm.xlu0 %3862, %v2560_v36   ;;  %2727 = vperm.xlu1 %3863, %v2490_v19   ;;  %v3036_v36 = vsub.f32 %v3012_v58, %v3953_v15 }
 0x4e6   : > { %v3792_v10 = vpop.f32.mrf.mxu1 }
 0x4e8   : > { %v2630_v1 = vpop.f32.mrf.mxu1 }
 0x4e9   : > { %2742 = vperm.xlu0 %3862, %v2700_v16   ;;  %2737 = vperm.xlu1 %3863, %v2630_v1  }
 0x4ea   : > { %v3802_v37 = vpop.f32.mrf.mxu1 }
 0x4ed   : > { %3051 = vrot.lane.b32.xlu0 %v3033_v39, %s4057_s22  ;;  %3049 = vrot.lane.b32.xlu1 %v3032_v43, %s4057_s22 }
 0x4f1   : > { %3055 = vrot.lane.b32.xlu0 %v3035_v41, %s4057_s22  ;;  %3053 = vrot.lane.b32.xlu1 %v3034_v49, %s4057_s22 }
 0x4f5   : > { %3059 = vrot.lane.b32.xlu0 %v3037_v59, %s4057_s22  ;;  %3057 = vrot.lane.b32.xlu1 %v3036_v36, %s4057_s22 }
 0x4f9   : > { %3063 = vrot.lane.b32.xlu0 %v3039_v54, %s4057_s22  ;;  %3061 = vrot.lane.b32.xlu1 %v3038_v12, %s4057_s22 }
 0x550   : > { %v2708_v14 = vpop.permute.xlu0 %2707 }
 0x551   : > { %v2751_v16 = vmul.f32 %v3544_v9, %v2708_v14 }
 0x553   : > { %v4529_v18 = vadd.f32 %v3545_v13, %v2751_v16 }
 0x554   : > { %v2713_v42 = vpop.permute.xlu1 %2712 }
 0x555   : > { %v2782_v19 = vmin.f32 %v4529_v18, 0.0  ;;  %v2752_v20 = vmul.f32 %v3544_v9, %v2713_v42  ;;  %vm2774_vm7 = vcmp.gt.f32.partialorder %v4529_v18, 0.0 }
 0x557   : > { %v2790_v6 = vmul.f32 1.442695, %v2782_v19  ;;  %v2767_v11 = vadd.f32 %v3545_v13, %v2752_v20 }
 0x558   : > { %v2718_v22 = vpop.permute.xlu1 %2717 }
 0x559   : > { %v2783_v10 = vmin.f32 %v2767_v11, 0.0  ;;  %v2753_v23 = vmul.f32 %v3544_v9, %v2718_v22  ;;  %3960 = vpow2.f32 %v2790_v6  ;;  %vm2775_vm2 = vcmp.gt.f32.partialorder %v2767_v11, 0.0 }
 0x55b   : > { %v2792_v24 = vmul.f32 1.442695, %v2783_v10  ;;  %v4532_v1 = vadd.f32 %v3545_v13, %v2753_v23 }
 0x55c   : > { %v2723_v25 = vpop.permute.xlu0 %2722 }
 0x55d   : > { %3962 = vpow2.f32 %v2792_v24  ;;  %v2784_v26 = vmin.f32 %v4532_v1, 0.0  ;;  %v2754_v27 = vmul.f32 %v3544_v9, %v2723_v25  ;;  %vm2776_vm8 = vcmp.gt.f32.partialorder %v4532_v1, 0.0 }
 0x55f   : > { %v2794_v28 = vmul.f32 1.442695, %v2784_v26  ;;  %v4535_v31 = vadd.f32 %v3545_v13, %v2754_v27 }
 0x560   : > { %v2733_v33 = vpop.permute.xlu0 %2732  ;;  %v2728_v37 = vpop.permute.xlu1 %2727 }
 0x561   : > { %3964 = vpow2.f32 %v2794_v28  ;;  %v2785_v39 = vmin.f32 %v4535_v31, 0.0  ;;  %v2756_v43 = vmul.f32 %v3544_v9, %v2733_v33  ;;  %v2755_v38 = vmul.f32 %v3544_v9, %v2728_v37 }
 0x562   : > { %vm2777_vm9 = vcmp.gt.f32.partialorder %v4535_v31, 0.0 }
 0x563   : > { %v2796_v51 = vmul.f32 1.442695, %v2785_v39  ;;  %v4538_v53 = vadd.f32 %v3545_v13, %v2756_v43  ;;  %v4540_v46 = vadd.f32 %v3545_v13, %v2755_v38 }
 0x564   : > { %v2743_v55 = vpop.permute.xlu0 %2742  ;;  %v2738_v57 = vpop.permute.xlu1 %2737 }
 0x565   : > { %3966 = vpow2.f32 %v2796_v51  ;;  %v2787_v49 = vmin.f32 %v4538_v53, 0.0  ;;  %v2758_v41 = vmul.f32 %v3544_v9, %v2743_v55  ;;  %v2786_v58 = vmin.f32 %v4540_v46, 0.0 }
 0x566   : > { %v2757_v61 = vmul.f32 %v3544_v9, %v2738_v57  ;;  %v3961_v17 = vpop.eup %3960  ;;  %vm2779_vm10 = vcmp.gt.f32.partialorder %v4538_v53, 0.0  ;;  %vm2778_vm11 = vcmp.gt.f32.partialorder %v4540_v46, 0.0 }
 0x567   : > { %v2800_v63 = vmul.f32 1.442695, %v2787_v49  ;;  %v4544_v15 = vadd.f32 %v3545_v13, %v2758_v41  ;;  %v2798_v21 = vmul.f32 1.442695, %v2786_v58  ;;  %v3546_v5 = vadd.f32 -1.0, %v3961_v17 }
 0x568   : > { %v4546_v8 = vadd.f32 %v3545_v13, %v2757_v61  ;;  %v3052_v4 = vpop.permute.xlu0 %3051  ;;  %v3050_v36 = vpop.permute.xlu1 %3049 }
 0x569   : > { %3968 = vpow2.f32 %v2800_v63  ;;  %v2789_v59 = vmin.f32 %v4544_v15, 0.0  ;;  %v3075_v54 = vsel %vm3073_vm1, %v3052_v4, 0.0  ;;  %v3074_v9 = vsel %vm3073_vm1, %v3050_v36, 0.0 }
 0x56a   : > { %v3963_v47 = vpop.eup %3962  ;;  %3970 = vpow2.f32 %v2798_v21  ;;  %v2788_v29 = vmin.f32 %v4546_v8, 0.0  ;;  %v3076_v14 = vadd.f32 %v3075_v54, %v3074_v9  ;;  %v2814_v22 = vsel %vm2774_vm7, %v4529_v18, %v3546_v5 }
 0x56b   : > { %v3547_v0 = vadd.f32 -1.0, %v3963_v47  ;;  %v2804_v12 = vmul.f32 1.442695, %v2789_v59  ;;  %vm2781_vm13 = vcmp.gt.f32.partialorder %v4544_v15, 0.0  ;;  %vm2780_vm14 = vcmp.gt.f32.partialorder %v4546_v8, 0.0 }
 0x56c   : > { %v2802_v13 = vmul.f32 1.442695, %v2788_v29  ;;  %v3056_v16 = vpop.permute.xlu0 %3055  ;;  %v3054_v42 = vpop.permute.xlu1 %3053 }
 0x56d   : > { %v2815_v19 = vsel %vm2775_vm2, %v2767_v11, %v3547_v0  ;;  %3972 = vpow2.f32 %v2804_v12  ;;  %v3077_v20 = vsel %vm3073_vm1, %v3054_v42, 0.0  ;;  %v3079_v25 = vsel %vm3073_vm1, %v3056_v16, 0.0 }
 0x56e   : > { %v3965_v6 = vpop.eup %3964  ;;  %3974 = vpow2.f32 %v2802_v13  ;;  %v3078_v10 = vadd.f32 %v3077_v20, %v3076_v14  ;;  %v3104_v23 = vsub.f32 %v4297_v52, %v2815_v19  ;;  %v3103_v11 = vsub.f32 %v4291_v50, %v2814_v22 }
 0x56f   : > { %v3548_v24 = vadd.f32 -1.0, %v3965_v6  ;;  %vm3100_vm2 = vcmask 0  }
 0x570   : > { %v3060_v26 = vpop.permute.xlu0 %3059  ;;  %v3080_v27 = vadd.f32 %v3079_v25, %v3078_v10  ;;  %v3058_v28 = vpop.permute.xlu1 %3057  ;;  %v3112_v38 = vmul.f32 %v3104_v23, %v3104_v23  ;;  %v3111_v58 = vmul.f32 %v3103_v11, %v3103_v11 }
 0x571   : > { %v2816_v33 = vsel %vm2776_vm8, %v4532_v1, %v3548_v24  ;;  %v3081_v37 = vsel %vm3073_vm1, %v3058_v28, 0.0  ;;  %v3083_v55 = vsel %vm3073_vm1, %v3060_v26, 0.0 }
 0x572   : > { %v3967_v39 = vpop.eup %3966  ;;  %v3105_v18 = vsub.f32 %v4303_v56, %v2816_v33  ;;  %v3082_v43 = vadd.f32 %v3081_v37, %v3080_v27  ;;  %v3120_v59 = vsel %vm1908_vm12, %v3112_v38, 0.0  ;;  %v3119_v54 = vsel %vm1908_vm12, %v3111_v58, 0.0 }
 0x573   : > { %v3549_v51 = vadd.f32 -1.0, %v3967_v39  ;;  %v3121_v14 = vadd.f32 %v3120_v59, %v3119_v54 }
 0x574   : > { %v3064_v57 = vpop.permute.xlu0 %3063  ;;  %v3084_v49 = vadd.f32 %v3083_v55, %v3082_v43  ;;  %v3062_v41 = vpop.permute.xlu1 %3061  ;;  %v3113_v61 = vmul.f32 %v3105_v18, %v3105_v18 }
 0x575   : > { %v2817_v17 = vsel %vm2777_vm9, %v4535_v31, %v3549_v51  ;;  %v3085_v1 = vsel %vm3073_vm1, %v3062_v41, 0.0  ;;  %v3087_v5 = vsel %vm3073_vm1, %v3064_v57, 0.0  ;;  %vm2946_vm1 = vcmask 1047559  }
 0x576   : > { %v3969_v63 = vpop.eup %3968  ;;  %v3106_v21 = vsub.f32 %v4318_v62, %v2817_v17  ;;  %v3086_v4 = vadd.f32 %v3085_v1, %v3084_v49  ;;  %v3122_v31 = vsel %vm1908_vm12, %v3113_v61, 0.0 }
 0x577   : > { %v3971_v36 = vpop.eup %3970  ;;  %v3551_v47 = vadd.f32 -1.0, %v3969_v63  ;;  %v3123_v23 = vadd.f32 %v3122_v31, %v3121_v14 }
 0x578   : > { %v3114_v29 = vmul.f32 %v3106_v21, %v3106_v21  ;;  %v3550_v0 = vadd.f32 -1.0, %v3971_v36  ;;  %v3088_v12 = vadd.f32 %v3087_v5, %v3086_v4 }
 0x579   : > { %v2819_v9 = vsel %vm2779_vm10, %v4538_v53, %v3551_v47 }
 0x57a   : > { %v3973_v13 = vpop.eup %3972  ;;  %v3108_v16 = vsub.f32 %v4336_v3, %v2819_v9  ;;  %v2818_v42 = vsel %vm2778_vm11, %v4540_v46, %v3550_v0  ;;  %3089 = vadd.xlane.f32.xlu1 %v3088_v12  ;;  %v3124_v22 = vsel %vm1908_vm12, %v3114_v29, 0.0 }
 0x57b   : > { %v3975_v19 = vpop.eup %3974  ;;  %v3107_v20 = vsub.f32 %v4311_v60, %v2818_v42  ;;  %v3553_v6 = vadd.f32 -1.0, %v3973_v13  ;;  %v3125_v27 = vadd.f32 %v3124_v22, %v3123_v23 }
 0x57c   : > { %v3552_v10 = vadd.f32 -1.0, %v3975_v19  ;;  %v3116_v25 = vmul.f32 %v3108_v16, %v3108_v16 }
 0x57d   : > { %v3115_v53 = vmul.f32 %v3107_v20, %v3107_v20  ;;  %v2821_v24 = vsel %vm2781_vm13, %v4544_v15, %v3553_v6 }
 0x57e   : > { %v2820_v26 = vsel %vm2780_vm14, %v4546_v8, %v3552_v10  ;;  %v3110_v46 = vsub.f32 %v4354_v7, %v2821_v24  ;;  %v3128_v18 = vsel %vm1908_vm12, %v3116_v25, 0.0 }
 0x57f   : > { %v3109_v28 = vsub.f32 %v4328_v2, %v2820_v26  ;;  %v3126_v11 = vsel %vm1908_vm12, %v3115_v53, 0.0 }
 0x580   : > { %v3127_v33 = vadd.f32 %v3126_v11, %v3125_v27  ;;  %v3118_v39 = vmul.f32 %v3110_v46, %v3110_v46 }
 0x581   : > { %v3117_v37 = vmul.f32 %v3109_v28, %v3109_v28 }
 0x582   : > { %v3129_v43 = vadd.f32 %v3128_v18, %v3127_v33  ;;  %v3132_v15 = vsel %vm1908_vm12, %v3118_v39, 0.0 }
 0x583   : > { %v3130_v38 = vsel %vm1908_vm12, %v3117_v37, 0.0 }
 0x584   : > { %v3131_v51 = vadd.f32 %v3130_v38, %v3129_v43 }
 0x586   : > { %v3133_v55 = vadd.f32 %v3132_v15, %v3131_v51 }
 0x588   : > { %3134 = vadd.xlane.f32.xlu0 %v3133_v55 }
 0x58b   : > { %2829 = vperm.xlu1 %3863, %v4460_v40  }
 0x58f   : > { %2834 = vperm.xlu1 %3863, %v4473_v45  }
 0x593   : > { %2844 = vperm.xlu1 %3863, %v4489_v35  }
 0x597   : > { %2854 = vperm.xlu1 %3863, %v4504_v44  }
 0x59e   : > { %2824 = vperm.xlu0 %3862, %v4457_v34  }
 0x5a2   : > { %2839 = vperm.xlu0 %3862, %v4475_v48  }
 0x5a6   : > { %2849 = vperm.xlu0 %3862, %v4478_v30  }
 0x5aa   : > { %2859 = vperm.xlu0 %3862, %v4497_v32  }
 0x603   : > { %v3090_v8 = vpop.xlane.xlu1 %3089 }
 0x604   : > { %v3091_v57 = vrot.slane %v3090_v8, 4 }
 0x606   : > { %v3092_v49 = vadd.f32 %v3091_v57, %v3090_v8 }
 0x607   : > { %v2830_v41 = vpop.permute.xlu1 %2829 }
 0x608   : > { %v3093_v58 = vrot.slane %v3092_v49, 2  ;;  %v2863_v45 = vmul.f32 %v2830_v41, %v4297_v52 }
 0x60a   : > { %v3094_v40 = vadd.f32 %v3093_v58, %v3092_v49  ;;  %v2877_v48 = vsel %vm1908_vm12, %v2863_v45, 0.0 }
 0x60b   : > { %v2835_v61 = vpop.permute.xlu1 %2834  ;;  %v2878_v32 = vrot.slane %v2877_v48, 4 }
 0x60c   : > { %v3095_v35 = vrot.slane %v3094_v40, 1  ;;  %v2864_v44 = vmul.f32 %v2835_v61, %v4303_v56 }
 0x60d   : > { %v2879_v52 = vadd.f32 %v2878_v32, %v2877_v48 }
 0x60e   : > { %v3096_v17 = vadd.f32 %v3095_v35, %v3094_v40  ;;  %v2884_v63 = vsel %vm1908_vm12, %v2864_v44, 0.0 }
 0x60f   : > { %v2845_v34 = vpop.permute.xlu1 %2844  ;;  %v2885_v59 = vrot.slane %v2884_v63, 4  ;;  %v2880_v13 = vrot.slane %v2879_v52, 2 }
 0x610   : > { %3830 = vpush %v3096_v17  ;;  %v2866_v21 = vmul.f32 %v2845_v34, %v4311_v60 }
 0x611   : > { %v3135_v30 = vpop.xlane.xlu0 %3134  ;;  %v2886_v12 = vadd.f32 %v2885_v59, %v2884_v63  ;;  %v2881_v10 = vadd.f32 %v2880_v13, %v2879_v52 }
 0x612   : > { %v3136_v1 = vrot.slane %v3135_v30, 4  ;;  %v2898_v5 = vsel %vm1908_vm12, %v2866_v21, 0.0 }
 0x613   : > { %v2855_v36 = vpop.permute.xlu1 %2854  ;;  %v2899_v54 = vrot.slane %v2898_v5, 4  ;;  %v2887_v20 = vrot.slane %v2886_v12, 2  ;;  %v2882_v11 = vrot.slane %v2881_v10, 1 }
 0x614   : > { %v3137_v4 = vadd.f32 %v3136_v1, %v3135_v30  ;;  %v2868_v56 = vmul.f32 %v2855_v36, %v4328_v2 }
 0x615   : > { %v2900_v6 = vadd.f32 %v2899_v54, %v2898_v5  ;;  %v2888_v26 = vadd.f32 %v2887_v20, %v2886_v12  ;;  %v2883_v57 = vadd.f32 %v2882_v11, %v2881_v10 }
 0x616   : > { %v3138_v47 = vrot.slane %v3137_v4, 2  ;;  %v2912_v14 = vsel %vm1908_vm12, %v2868_v56, 0.0 }
 0x617   : > { %v2913_v22 = vrot.slane %v2912_v14, 4  ;;  %v2901_v46 = vrot.slane %v2900_v6, 2  ;;  %v2889_v51 = vrot.slane %v2888_v26, 1 }
 0x618   : > { %v3139_v29 = vadd.f32 %v3138_v47, %v3137_v4 }
 0x619   : > { %v2825_v0 = vpop.permute.xlu0 %2824  ;;  %v2914_v27 = vadd.f32 %v2913_v22, %v2912_v14  ;;  %v2902_v15 = vadd.f32 %v2901_v46, %v2900_v6  ;;  %v2890_v17 = vadd.f32 %v2889_v51, %v2888_v26  ;;  %v3102_v14 = vld [vmem:[#allocation6] sm:$0x1] }
 0x61a   : > { %v2862_v31 = vmul.f32 %v2825_v0, %v4291_v50  ;;  %v3140_v9 = vrot.slane %v3139_v29, 1 }
 0x61b   : > { %v2915_v55 = vrot.slane %v2914_v27, 2  ;;  %v2903_v44 = vrot.slane %v2902_v15, 1 }
 0x61c   : > { %v2870_v60 = vsel %vm1908_vm12, %v2862_v31, 0.0  ;;  %v3141_v16 = vadd.f32 %v3140_v9, %v3139_v29  ;;  %v3040_v31 = vld [vmem:[#allocation4] sm:$0x1] }
 0x61d   : > { %v2871_v42 = vrot.slane %v2870_v60, 4  ;;  %v2840_v19 = vpop.permute.xlu0 %2839  ;;  %v2916_v34 = vadd.f32 %v2915_v55, %v2914_v27  ;;  %v2904_v4 = vadd.f32 %v2903_v44, %v2902_v15 }
 0x61e   : > { %v2865_v2 = vmul.f32 %v2840_v19, %v4318_v62  ;;  %3832 = vpush %v3141_v16 }
 0x61f   : > { %v2872_v23 = vadd.f32 %v2871_v42, %v2870_v60  ;;  %v2917_v36 = vrot.slane %v2916_v34, 1 }
 0x620   : > { %v2891_v53 = vsel %vm1908_vm12, %v2865_v2, 0.0 }
 0x621   : > { %v2873_v50 = vrot.slane %v2872_v23, 2  ;;  %v2892_v24 = vrot.slane %v2891_v53, 4  ;;  %v2850_v25 = vpop.permute.xlu0 %2849  ;;  %v2918_v29 = vadd.f32 %v2917_v36, %v2916_v34 }
 0x622   : > { %v2867_v28 = vmul.f32 %v2850_v25, %v4336_v3 }
 0x623   : > { %v2874_v33 = vadd.f32 %v2873_v50, %v2872_v23  ;;  %v2893_v37 = vadd.f32 %v2892_v24, %v2891_v53 }
 0x624   : > { %v2905_v39 = vsel %vm1908_vm12, %v2867_v28, 0.0 }
 0x625   : > { %v2875_v62 = vrot.slane %v2874_v33, 1  ;;  %v2894_v18 = vrot.slane %v2893_v37, 2  ;;  %v2906_v43 = vrot.slane %v2905_v39, 4  ;;  %v2860_v38 = vpop.permute.xlu0 %2859 }
 0x626   : > { %v2869_v8 = vmul.f32 %v2860_v38, %v4354_v7 }
 0x627   : > { %v2876_v49 = vadd.f32 %v2875_v62, %v2874_v33  ;;  %v2895_v41 = vadd.f32 %v2894_v18, %v2893_v37  ;;  %v2907_v58 = vadd.f32 %v2906_v43, %v2905_v39 }
 0x628   : > { %v2919_v3 = vsel %vm1908_vm12, %v2869_v8, 0.0 }
 0x629   : > { %v2935_v40 = vsel %vm2934_vm15, %v2883_v57, %v2876_v49  ;;  %v2896_v61 = vrot.slane %v2895_v41, 1  ;;  %v2908_v45 = vrot.slane %v2907_v58, 2  ;;  %v2920_v35 = vrot.slane %v2919_v3, 4 }
 0x62a   : > { %v2937_v32 = vsel %vm2936_vm0, %v2890_v17, %v2935_v40 }
 0x62b   : > { %v2897_v48 = vadd.f32 %v2896_v61, %v2895_v41  ;;  %v2909_v30 = vadd.f32 %v2908_v45, %v2907_v58  ;;  %v2921_v1 = vadd.f32 %v2920_v35, %v2919_v3 }
 0x62d   : > { %v2939_v7 = vsel %vm2938_vm3, %v2897_v48, %v2937_v32  ;;  %v2910_v63 = vrot.slane %v2909_v30, 1  ;;  %v2922_v21 = vrot.slane %v2921_v1, 2 }
 0x62e   : > { %v2941_v52 = vsel %vm2940_vm4, %v2904_v4, %v2939_v7 }
 0x62f   : > { %v2911_v59 = vadd.f32 %v2910_v63, %v2909_v30  ;;  %v2923_v47 = vadd.f32 %v2922_v21, %v2921_v1 }
 0x631   : > { %v2943_v5 = vsel %vm2942_vm5, %v2911_v59, %v2941_v52  ;;  %v2924_v56 = vrot.slane %v2923_v47, 1 }
 0x632   : > { %v2945_v12 = vsel %vm2944_vm6, %v2918_v29, %v2943_v5 }
 0x633   : > { %v2925_v0 = vadd.f32 %v2924_v56, %v2923_v47 }
 0x635   : > { %v2947_v54 = vsel %vm2946_vm1, %v2925_v0, %v2945_v12 }
 0x636   : > { %2951 = vst.msk [vmem:[%s2950_s27] sm:$0xff] %vm1908_vm12, %v2947_v54 }
 0x641   : > { %s3831_s28 = spop %3830 }
 0x642   : > { %v3098_v9 = vstv %s3831_s28 }
 0x643   : > { %v3099_v13 = vadd.f32 %v3098_v9, %v3040_v31 }
 0x645   : > { %3101 = vst.msk [vmem:[#allocation4] sm:$0x1] %vm3100_vm2, %v3099_v13 }
 0x64f   : > { %s3833_s29 = spop %3832  ;;  %3149 = sbr.rel (%p3555_p5) target bundleno = 2364 (0x93c), region = 80 }
 0x650   : > { %v3143_v60 = vstv %s3833_s29 }
 0x651   : > { %v3144_v16 = vadd.f32 %v3143_v60, %v3102_v14 }
 0x653   : > { %3145 = vst.msk [vmem:[#allocation6] sm:$0x1] %vm3100_vm2, %v3144_v16 }
 0x654   : > { %v3150_v42 = vld [vmem:[#allocation4] sm:$0x1]  ;;  %v3161_v20 = vld [vmem:[%s4699_s8 + $0x18] sm:$0xff]  ;;  %v3159_v10 = vld [vmem:[%s4699_s8 + $0x8] sm:$0xff]  ;;  %vm3354_vm9 = vcmask 31744  }
 0x655   : > { %v3151_v6 = vmul.f32 -3.0517578e-05, %v3150_v42  ;;  %3808 = vmatprep.subr.mxu0 %v3161_v20  ;;  %v3160_v2 = vld [vmem:[%s4699_s8 + $0x10] sm:$0xff]  ;;  %v3156_v23 = vld [vmem:[#allocation2] sm:$0xff]  ;;  %v3157_v50 = vld [vmem:[#allocation2 + $0x8] sm:$0xff] }
 0x656   : > { %3809 = vmatpush3.msra.mxu0 %v3161_v20  ;;  %3816 = vmatprep.mubr.msk.f32.mxu0 %vm1908_vm12, %v3156_v23  ;;  %v3158_v53 = vld [vmem:[%s4699_s8] sm:$0xff]  ;;  %v3265_v24 = vld [vmem:[%s4701_s10 + $0x18] sm:$0xff]  ;;  %v3264_v25 = vld [vmem:[%s4701_s10 + $0x10] sm:$0xff] }
 0x657   : > { %3152 = vst.msk [vmem:[#allocation4] sm:$0x1] %vm3100_vm2, %v3151_v6  ;;  %3810 = vmatprep.subr.mxu0 %v3160_v2  ;;  %3819 = vmatprep.subr.mxu1 %v3265_v24  ;;  %v3263_v26 = vld [vmem:[%s4701_s10 + $0x8] sm:$0xff]  ;;  %v3262_v46 = vld [vmem:[%s4701_s10] sm:$0xff] }
 0x658   : > { %3811 = vmatpush3.msra.mxu0 %v3160_v2  ;;  %3820 = vmatpush3.msra.mxu1 %v3265_v24  ;;  %v3556_v27 = vld [vmem:[%s4700_s9] ss:$0 sm:$0xff] }
 0x659   : > { %3812 = vmatprep.subr.mxu0 %v3159_v10  ;;  %3821 = vmatprep.subr.mxu1 %v3264_v25  ;;  %v3561_v41 = vld [vmem:[%s4702_s11] ss:$0 sm:$0xff] }
 0x65a   : > { %v3153_v19 = vld [vmem:[#allocation6] sm:$0x1]  ;;  %3813 = vmatpush3.msra.mxu0 %v3159_v10  ;;  %3822 = vmatpush3.msra.mxu1 %v3264_v25 }
 0x65b   : > { %v3154_v22 = vmul.f32 0.00024414063, %v3153_v19  ;;  %3814 = vmatprep.subr.mxu0 %v3158_v53  ;;  %3823 = vmatprep.subr.mxu1 %v3263_v26 }
 0x65c   : > { %3815 = vmatpush3.msra.mxu0 %v3158_v53  ;;  %3824 = vmatpush3.msra.mxu1 %v3263_v26 }
 0x65d   : > { %3155 = vst.msk [vmem:[#allocation6] sm:$0x1] %vm3100_vm2, %v3154_v22  ;;  %3817 = vmatmul.mubr.msk.f32.vlgmr.msra.gmra.mxu0 %vm1908_vm12, %v3157_v50  ;;  %3825 = vmatprep.subr.mxu1 %v3262_v46 }
 0x65e   : > { %3826 = vmatpush3.msra.mxu1 %v3262_v46 }
 0x71d   : > { %v3818_v28 = vpop.f32.mrf.mxu0 }
 0x71e   : > { %v3247_v11 = vadd.f32 %v3818_v28, %v3556_v27 }
 0x71f   : > { %v3241_v33 = vpop.f32.mrf.mxu0 }
 0x720   : > { %v3253_v37 = vmin.f32 %v3247_v11, 0.0  ;;  %v3242_v39 = vadd.f32 %v3556_v27, %v3241_v33  ;;  %vm3251_vm8 = vcmp.gt.f32.partialorder %v3247_v11, 0.0 }
 0x722   : > { %v3256_v62 = vmul.f32 1.442695, %v3253_v37  ;;  %v3252_v18 = vmin.f32 %v3242_v39, 0.0  ;;  %vm3250_vm7 = vcmp.gt.f32.partialorder %v3242_v39, 0.0 }
 0x724   : > { %3976 = vpow2.f32 %v3256_v62  ;;  %v3254_v43 = vmul.f32 1.442695, %v3252_v18 }
 0x726   : > { %3978 = vpow2.f32 %v3254_v43 }
 0x731   : > { %v3977_v38 = vpop.eup %3976 }
 0x732   : > { %v3560_v15 = vadd.f32 -1.0, %v3977_v38 }
 0x733   : > { %v3979_v51 = vpop.eup %3978 }
 0x734   : > { %v3559_v55 = vadd.f32 -1.0, %v3979_v51  ;;  %v3261_v57 = vsel %vm3251_vm8, %v3247_v11, %v3560_v15 }
 0x736   : > { %v3260_v8 = vsel %vm3250_vm7, %v3242_v39, %v3559_v55 }
 0x737   : > { %3827 = vmatprep.mubr.msk.f32.mxu1 %vm1908_vm12, %v3260_v8 }
 0x738   : > { %3828 = vmatmul.mubr.msk.f32.vlgmr.msra.gmra.mxu1 %vm1908_vm12, %v3261_v57 }
 0x7f8   : > { %v3829_v49 = vpop.f32.mrf.mxu1 }
 0x7f9   : > { %v3351_v40 = vadd.f32 %v3829_v49, %v3561_v41 }
 0x7fa   : > { %v3345_v58 = vpop.f32.mrf.mxu1 }
 0x7fb   : > { %v3346_v3 = vadd.f32 %v3561_v41, %v3345_v58  ;;  %v3358_v45 = vsel %vm3354_vm9, %v3351_v40, -inf }
 0x7fd   : > { %v3355_v61 = vsel %vm3354_vm9, %v3346_v3, -inf }
 0x7fe   : > { %3356 = vmax.xlane.f32.xlu0 %v3355_v61 }
 0x802   : > { %3359 = vmax.xlane.f32.xlu0 %v3358_v45 }
 0x887   : > { %v3357_v35 = vpop.xlane.xlu0 %3356 }
 0x888   : > { %v3361_v17 = vsub.f32 %v3346_v3, %v3357_v35 }
 0x88a   : > { %v3363_v44 = vmul.f32 1.442695, %v3361_v17 }
 0x88b   : > { %v3360_v34 = vpop.xlane.xlu0 %3359 }
 0x88c   : > { %3980 = vpow2.f32 %v3363_v44  ;;  %v3362_v48 = vsub.f32 %v3351_v40, %v3360_v34 }
 0x88e   : > { %v3365_v30 = vmul.f32 1.442695, %v3362_v48 }
 0x890   : > { %3982 = vpow2.f32 %v3365_v30 }
 0x899   : > { %v3981_v1 = vpop.eup %3980 }
 0x89a   : > { %v3367_v32 = vsel %vm3354_vm9, %v3981_v1, 0.0 }
 0x89b   : > { %3368 = vadd.xlane.f32.xlu1 %v3367_v32 }
 0x89d   : > { %v3983_v7 = vpop.eup %3982 }
 0x89e   : > { %v3370_v63 = vsel %vm3354_vm9, %v3983_v7, 0.0 }
 0x89f   : > { %3371 = vadd.xlane.f32.xlu1 %v3370_v63 }
 0x924   : > { %v3369_v21 = vpop.xlane.xlu1 %3368 }
 0x925   : > { %3984 = vlog2.f32 %v3369_v21 }
 0x928   : > { %v3372_v4 = vpop.xlane.xlu1 %3371 }
 0x929   : > { %3986 = vlog2.f32 %v3372_v4 }
 0x932   : > { %v3985_v36 = vpop.eup %3984 }
 0x933   : > { %v3374_v59 = vmul.f32 0.6931472, %v3985_v36 }
 0x935   : > { %v3377_v47 = vsub.f32 %v3361_v17, %v3374_v59 }
 0x936   : > { %v3987_v52 = vpop.eup %3986 }
 0x937   : > { %3379 = vst.msk [vmem:[%s4704_s13] sm:$0xff] %vm3354_vm9, %v3377_v47  ;;  %v3376_v5 = vmul.f32 0.6931472, %v3987_v52 }
 0x939   : > { %v3378_v56 = vsub.f32 %v3362_v48, %v3376_v5 }
 0x93b   : > { %3380 = vst.msk [vmem:[%s4704_s13 + $0x8] sm:$0xff] %vm3354_vm9, %v3378_v56 }
 0x93c PF: > { %p3842_p6 = scmp.eq.s32.totalorder %s4149_s21, 1  ;;  %s4058_s26 = smov [#allocation4]  }
 0x93d   : > { %s3391_s27 = sshll.u32 %s4058_s26, 4  ;;  %s4059_s28 = smov [#allocation6]   ;;  %s3392_s27 = int_to_ptr.vmem [resolvable:$true] %s3391_s27 }
 0x93e   : > { %s3402_s29 = sshll.u32 %s4059_s28, 4  ;;  %s3988_s12 = scalar_lea.vmem %s3392_s27, 16  ;;  %s3403_s29 = int_to_ptr.vmem [resolvable:$true] %s3402_s29 }
 0x93f   : > { %p3989_p7 = scmp.ne.s32.totalorder %s3392_s27, %s3988_s12  ;;  %s3994_s30 = scalar_lea.vmem %s3392_s27, 32 }
 0x940   : > { %p3995_p10 = scmp.lt.s32.totalorder %s3392_s27, %s3392_s27  ;;  %p3996_p11 = scmp.lt.s32.totalorder %s3994_s30, %s3988_s12 }
 0x941   : > { %p3990_p8 = pnand %p3989_p7, %p3842_p6 }
 0x942   : > { %p3997_p12 = por %p3996_p11, %p3995_p10 }
 0x943   : > { %p3991_p9 = pneg %p3990_p8 }
 0x945   : > { %p3998_p13 = pnand %p3997_p12, %p3991_p9 }
 0x947   : > { %4001 = shalt.err (!%p3998_p13)
}
 0x948   : > { %3835 = dma.vmem_to_hbm [thread:$0]  (%p3842_p6), %s3392_s27, 16, %s4705_s14, [#allocation5]  }
 0x949   : > { %s4012_s18 = scalar_lea.vmem %s3403_s29, 16  ;;  %s4018_s19 = scalar_lea.vmem %s3403_s29, 32 }
 0x94a   : > { %p4013_p0 = scmp.ne.s32.totalorder %s3403_s29, %s4012_s18  ;;  %p4019_p3 = scmp.lt.s32.totalorder %s3403_s29, %s3403_s29 }
 0x94b   : > { %p4020_p4 = scmp.lt.s32.totalorder %s4018_s19, %s4012_s18 }
 0x94c   : > { %p4014_p1 = pnand %p4013_p0, %p3842_p6 }
 0x94d   : > { %p4021_p5 = por %p4020_p4, %p4019_p3 }
 0x94e   : > { %p4015_p2 = pneg %p4014_p1 }
 0x950   : > { %p4022_p7 = pnand %p4021_p5, %p4015_p2 }
 0x952   : > { %4025 = shalt.err (!%p4022_p7)
}
 0x953   : > { %3837 = dma.vmem_to_hbm [thread:$0]  (%p3842_p6), %s3403_s29, 16, %s4706_s15, [#allocation7]  }
 0x954   : > { %4041 = dma.done.wait (%p3842_p6), [#allocation5], 16  }
 0x955   : > { %4043 = vsyncadd (%p3842_p6), [#allocation5], 4294967280 }
 0x956   : > { %4045 = dma.done.wait (%p3842_p6), [#allocation7], 16  }
 0x957   : > { %4047 = vsyncadd (%p3842_p6), [#allocation7], 4294967280 }
 0x958 PF: > { %s29_s20 = sadd.s32 1, %s4050_s20  }
 0x959   : > { %p26_p8 = scmp.ge.s32.totalorder %s29_s20, 4  }
 0x95b   :  { %28 = sbr.rel (!%p26_p8) target bundleno = 4 (0x4), region = 127 }
 0x960   :  { %3422 = vsyncpa [#allocation5], 1 }
 0x961   :  { %3424 = vsyncpa [#allocation5 + $0x1], 1 }
 0x962   :  { %3425 = vsyncpa [#allocation7], 1 }

</bundles_post_ra>
